<compile_context>
chip_gen: v6e
topology: v6e:2x2x1
jax: 0.10.0
libtpu: 0.0.40
codegen_flags: <defaults>
</compile_context>

<pallas_src>
import functools

import jax
import jax.numpy as jnp
from jax.experimental import pallas as pl
from jax.experimental.pallas import tpu as pltpu


# ---------------------------------------------------------------------------
# Fused kernel: in-kernel im2col + matmul + bias + per-row softmax
# ---------------------------------------------------------------------------
def _fused_convt_softmax_kernel(x_ref, w_ref, b_ref, o_ref, pf_ref,
                                *, n, cin, cout, k, hin, win):
    # x_ref : (n*cin, hin*win)    raw input image(s), channel-major rows
    # w_ref : (cout, cin*k*k)     flipped conv-transpose weight, columns
    #                             ordered (kh*k + kw)*cin + c
    # b_ref : (cout, 1)           bias column
    # o_ref : (n*cout, hout*wout) lane-dense output, [o, i*wout + j]
    # pf_ref: (cin, pfw)          scratch: zero-gapped flat padded image
    hout, wout = hin + k - 1, win + k - 1
    npix = hout * wout
    pfw = pf_ref.shape[1]

    w = w_ref[...]                                   # (cout, cin*k*k)
    b = b_ref[...]                                   # (cout, 1)
    x_all = x_ref[...]                               # (n*cin, hin*win)

    lane = jax.lax.broadcasted_iota(jnp.int32, (1, npix), 1)

    for nn in range(n):                              # static, tiny batch
        xb = x_all[nn * cin:(nn + 1) * cin, :]       # (cin, hin*win)

        # --- gapped flat padded image ------------------------------------
        # pf[c, r*wout + q] = x_padded[c, r, q]  (q < wout); the dropped
        # right-padding columns alias the next row's left zero padding, so
        # every tap read pf[c, s + kh*wout + kw] is exactly the padded-image
        # value needed for output pixel s = i*wout + j.
        pf_ref[...] = jnp.zeros((cin, pfw), jnp.float32)
        for h in range(hin):
            start = (h + k - 1) * wout + (k - 1)
            pf_ref[:, start:start + win] = xb[:, h * win:(h + 1) * win]
        pf = pf_ref[...]                             # (cin, pfw)

        # --- im2col RHS: 25 static lane slices, aligned sublane concat ----
        slabs = []
        for kh in range(k):
            for kw in range(k):
                off = kh * wout + kw
                slabs.append(pf[:, off:off + npix])  # (cin, npix)
        sh = jnp.concatenate(slabs, axis=0)          # (cin*k*k, npix)

        # --- conv-transpose + bias: one f32 MXU matmul ---------------------
        acc = jnp.dot(w, sh, preferred_element_type=jnp.float32) + b  # (cout, npix)

        # --- softmax over each group of `wout` lanes (one group per hout) --
        out = jnp.zeros((cout, npix), jnp.float32)
        for i in range(hout):
            mask = jnp.logical_and(lane >= i * wout, lane < (i + 1) * wout)
            masked = jnp.where(mask, acc, -jnp.inf)
            m = jnp.max(masked, axis=-1, keepdims=True)      # (cout, 1)
            e = jnp.exp(masked - m)                          # 0 outside group
            s = jnp.sum(e, axis=-1, keepdims=True)           # (cout, 1)
            out = jnp.where(mask, e * pl.reciprocal(s), out)

        # Single lane-dense store.
        o_ref[nn * cout:(nn + 1) * cout, :] = out


def _fused_forward(x2d, w_mat, bias_col, *, n, cin, cout, k, hin, win):
    hout, wout = hin + k - 1, win + k - 1
    npix = hout * wout
    needed = npix + (k - 1) * wout + (k - 1)         # max flat index + 1
    pfw = ((needed + 127) // 128) * 128              # pad lanes to 128 mult.
    kernel = functools.partial(
        _fused_convt_softmax_kernel,
        n=n, cin=cin, cout=cout, k=k, hin=hin, win=win)
    return pl.pallas_call(
        kernel,
        out_shape=jax.ShapeDtypeStruct((n * cout, npix), jnp.float32),
        in_specs=[
            pl.BlockSpec(memory_space=pltpu.MemorySpace.VMEM),
            pl.BlockSpec(memory_space=pltpu.MemorySpace.VMEM),
            pl.BlockSpec(memory_space=pltpu.MemorySpace.VMEM),
        ],
        out_specs=pl.BlockSpec(memory_space=pltpu.MemorySpace.VMEM),
        scratch_shapes=[pltpu.VMEM((cin, pfw), jnp.float32)],
    )(x2d, w_mat, bias_col)


# ---------------------------------------------------------------------------
# Model wrapper
# ---------------------------------------------------------------------------
class PallasModel:
    """ConvTranspose2d(8, 64, 5, stride=1, padding=0, bias=True) -> view -> softmax."""

    def __init__(self, key, cin=8, cout=64, k=5):
        self.cin, self.cout, self.k = cin, cout, k
        kw_key, kb_key = jax.random.split(key)
        fan = cin * k * k
        bound = 1.0 / jnp.sqrt(float(fan))
        # PyTorch ConvTranspose2d weight layout: (Cin, Cout, kH, kW)
        self.weight = jax.random.uniform(
            kw_key, (cin, cout, k, k), jnp.float32, minval=-bound, maxval=bound)
        self.bias = jax.random.uniform(
            kb_key, (cout,), jnp.float32, minval=-bound, maxval=bound)

        # Hoisted per-model constants.  Spatially flipped weight, laid out as
        # (Cout, Cin*K*K) with column index (kh*K + kw)*Cin + c, matching the
        # in-kernel im2col row ordering.
        w_flip = self.weight[:, :, ::-1, ::-1]                  # (cin,cout,k,k)
        self.w_mat = jnp.asarray(
            w_flip.transpose(1, 2, 3, 0).reshape(cout, k * k * cin))
        self.bias_col = self.bias.reshape(cout, 1)

    def __call__(self, x):
        # x: NCHW float32, shape (N, Cin, Hin, Win)
        n, cin, hin, win = x.shape
        assert cin == self.cin
        k, cout = self.k, self.cout
        hout, wout = hin + k - 1, win + k - 1

        # (N, Cin, Hin, Win) -> (N*Cin, Hin*Win): pure bitcast.
        x2d = x.reshape(n * cin, hin * win)

        # Fused Pallas kernel: im2col + matmul + bias + softmax, lane-dense out.
        out = _fused_forward(x2d, self.w_mat, self.bias_col,
                             n=n, cin=cin, cout=cout, k=k, hin=hin, win=win)

        # Torch's .view(N*Cout*Hout, Wout): pure bitcast reshape of (N*Cout, Hout*Wout).
        return out.reshape(n * cout * hout, wout)


def _reference(model, x):
    """Pure-JAX reference for correctness check (regression guard)."""
    n, cin, hin, win = x.shape
    k, cout = model.k, model.cout
    hout, wout = hin + k - 1, win + k - 1
    out = jnp.zeros((n, cout, hout, wout), jnp.float32)
    for kh in range(k):
        for kw_ in range(k):
            contrib = jnp.einsum('nchw,co->nohw', x, model.weight[:, :, kh, kw_])
            out = out.at[:, :, kh:kh + hin, kw_:kw_ + win].add(contrib)
    out = out + model.bias[None, :, None, None]
    v1 = out.reshape(n * cout * hout, wout)
    return jax.nn.softmax(v1, axis=-1)


if __name__ == "__main__":
    key = jax.random.PRNGKey(0)
    k_model, k_x = jax.random.split(key)

    # NOTE: the original script's x1=(1,16,5,5) is inconsistent with
    # ConvTranspose2d(in_channels=8, ...); we use the consistent Cin=8.
    x = jax.random.normal(k_x, (1, 8, 5, 5), jnp.float32)

    model = PallasModel(k_model)
    fwd = jax.jit(model.__call__)

    out = jax.block_until_ready(fwd(x))

    ref = _reference(model, x)
    assert out.shape == (1 * 64 * 9, 9), out.shape
    assert jnp.allclose(out, ref, atol=1e-5, rtol=1e-5), "mismatch vs reference"

    print("KERNEL_OK")
</pallas_src>

<mosaic_0001>
module attributes {stable_mosaic.version = 11 : i64} {
  func.func @_fused_convt_softmax_kernel(%arg0: memref<8x25xf32, #tpu.memory_space<vmem>>, %arg1: memref<64x200xf32, #tpu.memory_space<vmem>>, %arg2: memref<64x1xf32, #tpu.memory_space<vmem>>, %arg3: memref<64x81xf32, #tpu.memory_space<vmem>>, %arg4: memref<8x128xf32, #tpu.memory_space<vmem>>) attributes {dimension_semantics = [], scalar_prefetch = 0 : i64, scratch_operands = 1 : i64, tpu.core_type = #tpu.core_type<tc>} {
    %c0 = arith.constant 0 : index
    %c0_0 = arith.constant 0 : index
    %0 = vector.load %arg1[%c0, %c0_0] : memref<64x200xf32, #tpu.memory_space<vmem>>, vector<64x200xf32>
    %c0_1 = arith.constant 0 : index
    %c0_2 = arith.constant 0 : index
    %1 = vector.load %arg2[%c0_1, %c0_2] : memref<64x1xf32, #tpu.memory_space<vmem>>, vector<64x1xf32>
    %c0_3 = arith.constant 0 : index
    %c0_4 = arith.constant 0 : index
    %2 = vector.load %arg0[%c0_3, %c0_4] : memref<8x25xf32, #tpu.memory_space<vmem>>, vector<8x25xf32>
    %3 = tpu.iota {dimensions = array<i32: 1>} : vector<1x81xi32>
    %cst = arith.constant 0.000000e+00 : f32
    %4 = vector.broadcast %cst : f32 to vector<8x128xf32>
    %c0_5 = arith.constant 0 : index
    %c0_6 = arith.constant 0 : index
    %5 = vector.load %arg4[%c0_5, %c0_6] : memref<8x128xf32, #tpu.memory_space<vmem>>, vector<8x128xf32>
    tpu.vector_store %arg4[%c0_5, %c0_6], %4 {strides = array<i32>} : memref<8x128xf32, #tpu.memory_space<vmem>>, vector<8x128xf32>,
    %6 = vector.extract_strided_slice %2 {offsets = [0, 0], sizes = [8, 5], strides = [1, 1]} : vector<8x25xf32> to vector<8x5xf32>
    %c0_7 = arith.constant 0 : index
    %c40 = arith.constant 40 : index
    %7 = vector.load %arg4[%c0_7, %c40] : memref<8x128xf32, #tpu.memory_space<vmem>>, vector<8x5xf32>
    tpu.vector_store %arg4[%c0_7, %c40], %6 {strides = array<i32>} : memref<8x128xf32, #tpu.memory_space<vmem>>, vector<8x5xf32>,
    %8 = vector.extract_strided_slice %2 {offsets = [0, 5], sizes = [8, 5], strides = [1, 1]} : vector<8x25xf32> to vector<8x5xf32>
    %c0_8 = arith.constant 0 : index
    %c49 = arith.constant 49 : index
    %9 = vector.load %arg4[%c0_8, %c49] : memref<8x128xf32, #tpu.memory_space<vmem>>, vector<8x5xf32>
    tpu.vector_store %arg4[%c0_8, %c49], %8 {strides = array<i32>} : memref<8x128xf32, #tpu.memory_space<vmem>>, vector<8x5xf32>,
    %10 = vector.extract_strided_slice %2 {offsets = [0, 10], sizes = [8, 5], strides = [1, 1]} : vector<8x25xf32> to vector<8x5xf32>
    %c0_9 = arith.constant 0 : index
    %c58 = arith.constant 58 : index
    %11 = vector.load %arg4[%c0_9, %c58] : memref<8x128xf32, #tpu.memory_space<vmem>>, vector<8x5xf32>
    tpu.vector_store %arg4[%c0_9, %c58], %10 {strides = array<i32>} : memref<8x128xf32, #tpu.memory_space<vmem>>, vector<8x5xf32>,
    %12 = vector.extract_strided_slice %2 {offsets = [0, 15], sizes = [8, 5], strides = [1, 1]} : vector<8x25xf32> to vector<8x5xf32>
    %c0_10 = arith.constant 0 : index
    %c67 = arith.constant 67 : index
    %13 = vector.load %arg4[%c0_10, %c67] : memref<8x128xf32, #tpu.memory_space<vmem>>, vector<8x5xf32>
    tpu.vector_store %arg4[%c0_10, %c67], %12 {strides = array<i32>} : memref<8x128xf32, #tpu.memory_space<vmem>>, vector<8x5xf32>,
    %14 = vector.extract_strided_slice %2 {offsets = [0, 20], sizes = [8, 5], strides = [1, 1]} : vector<8x25xf32> to vector<8x5xf32>
    %c0_11 = arith.constant 0 : index
    %c76 = arith.constant 76 : index
    %15 = vector.load %arg4[%c0_11, %c76] : memref<8x128xf32, #tpu.memory_space<vmem>>, vector<8x5xf32>
    tpu.vector_store %arg4[%c0_11, %c76], %14 {strides = array<i32>} : memref<8x128xf32, #tpu.memory_space<vmem>>, vector<8x5xf32>,
    %c0_12 = arith.constant 0 : index
    %c0_13 = arith.constant 0 : index
    %16 = vector.load %arg4[%c0_12, %c0_13] : memref<8x128xf32, #tpu.memory_space<vmem>>, vector<8x128xf32>
    %17 = vector.extract_strided_slice %16 {offsets = [0, 0], sizes = [8, 81], strides = [1, 1]} : vector<8x128xf32> to vector<8x81xf32>
    %18 = vector.extract_strided_slice %16 {offsets = [0, 1], sizes = [8, 81], strides = [1, 1]} : vector<8x128xf32> to vector<8x81xf32>
    %19 = vector.extract_strided_slice %16 {offsets = [0, 2], sizes = [8, 81], strides = [1, 1]} : vector<8x128xf32> to vector<8x81xf32>
    %20 = vector.extract_strided_slice %16 {offsets = [0, 3], sizes = [8, 81], strides = [1, 1]} : vector<8x128xf32> to vector<8x81xf32>
    %21 = vector.extract_strided_slice %16 {offsets = [0, 4], sizes = [8, 81], strides = [1, 1]} : vector<8x128xf32> to vector<8x81xf32>
    %22 = vector.extract_strided_slice %16 {offsets = [0, 9], sizes = [8, 81], strides = [1, 1]} : vector<8x128xf32> to vector<8x81xf32>
    %23 = vector.extract_strided_slice %16 {offsets = [0, 10], sizes = [8, 81], strides = [1, 1]} : vector<8x128xf32> to vector<8x81xf32>
    %24 = vector.extract_strided_slice %16 {offsets = [0, 11], sizes = [8, 81], strides = [1, 1]} : vector<8x128xf32> to vector<8x81xf32>
    %25 = vector.extract_strided_slice %16 {offsets = [0, 12], sizes = [8, 81], strides = [1, 1]} : vector<8x128xf32> to vector<8x81xf32>
    %26 = vector.extract_strided_slice %16 {offsets = [0, 13], sizes = [8, 81], strides = [1, 1]} : vector<8x128xf32> to vector<8x81xf32>
    %27 = vector.extract_strided_slice %16 {offsets = [0, 18], sizes = [8, 81], strides = [1, 1]} : vector<8x128xf32> to vector<8x81xf32>
    %28 = vector.extract_strided_slice %16 {offsets = [0, 19], sizes = [8, 81], strides = [1, 1]} : vector<8x128xf32> to vector<8x81xf32>
    %29 = vector.extract_strided_slice %16 {offsets = [0, 20], sizes = [8, 81], strides = [1, 1]} : vector<8x128xf32> to vector<8x81xf32>
    %30 = vector.extract_strided_slice %16 {offsets = [0, 21], sizes = [8, 81], strides = [1, 1]} : vector<8x128xf32> to vector<8x81xf32>
    %31 = vector.extract_strided_slice %16 {offsets = [0, 22], sizes = [8, 81], strides = [1, 1]} : vector<8x128xf32> to vector<8x81xf32>
    %32 = vector.extract_strided_slice %16 {offsets = [0, 27], sizes = [8, 81], strides = [1, 1]} : vector<8x128xf32> to vector<8x81xf32>
    %33 = vector.extract_strided_slice %16 {offsets = [0, 28], sizes = [8, 81], strides = [1, 1]} : vector<8x128xf32> to vector<8x81xf32>
    %34 = vector.extract_strided_slice %16 {offsets = [0, 29], sizes = [8, 81], strides = [1, 1]} : vector<8x128xf32> to vector<8x81xf32>
    %35 = vector.extract_strided_slice %16 {offsets = [0, 30], sizes = [8, 81], strides = [1, 1]} : vector<8x128xf32> to vector<8x81xf32>
    %36 = vector.extract_strided_slice %16 {offsets = [0, 31], sizes = [8, 81], strides = [1, 1]} : vector<8x128xf32> to vector<8x81xf32>
    %37 = vector.extract_strided_slice %16 {offsets = [0, 36], sizes = [8, 81], strides = [1, 1]} : vector<8x128xf32> to vector<8x81xf32>
    %38 = vector.extract_strided_slice %16 {offsets = [0, 37], sizes = [8, 81], strides = [1, 1]} : vector<8x128xf32> to vector<8x81xf32>
    %39 = vector.extract_strided_slice %16 {offsets = [0, 38], sizes = [8, 81], strides = [1, 1]} : vector<8x128xf32> to vector<8x81xf32>
    %40 = vector.extract_strided_slice %16 {offsets = [0, 39], sizes = [8, 81], strides = [1, 1]} : vector<8x128xf32> to vector<8x81xf32>
    %41 = vector.extract_strided_slice %16 {offsets = [0, 40], sizes = [8, 81], strides = [1, 1]} : vector<8x128xf32> to vector<8x81xf32>
    %42 = tpu.concatenate %17, %18, %19, %20, %21, %22, %23, %24, %25, %26, %27, %28, %29, %30, %31, %32 in 0 : vector<8x81xf32>, vector<8x81xf32>, vector<8x81xf32>, vector<8x81xf32>, vector<8x81xf32>, vector<8x81xf32>, vector<8x81xf32>, vector<8x81xf32>, vector<8x81xf32>, vector<8x81xf32>, vector<8x81xf32>, vector<8x81xf32>, vector<8x81xf32>, vector<8x81xf32>, vector<8x81xf32>, vector<8x81xf32> -> vector<128x81xf32>
    %43 = tpu.concatenate %33, %34, %35, %36, %37, %38, %39, %40, %41 in 0 : vector<8x81xf32>, vector<8x81xf32>, vector<8x81xf32>, vector<8x81xf32>, vector<8x81xf32>, vector<8x81xf32>, vector<8x81xf32>, vector<8x81xf32>, vector<8x81xf32> -> vector<72x81xf32>
    %44 = tpu.concatenate %42, %43 in 0 : vector<128x81xf32>, vector<72x81xf32> -> vector<200x81xf32>
    %cst_14 = arith.constant dense<0.000000e+00> : vector<64x81xf32>
    %45 = tpu.matmul %0, %44, %cst_14 {dimension_numbers = #tpu.dot_dimension_numbers<[1], [0], [0], [1], [0, 0, 1, 1], [], []>} : vector<64x200xf32>, vector<200x81xf32>, vector<64x81xf32> -> vector<64x81xf32>
    %46 = vector.broadcast %1 : vector<64x1xf32> to vector<64x81xf32>
    %47 = arith.addf %45, %46 : vector<64x81xf32>
    %cst_15 = arith.constant 0.000000e+00 : f32
    %48 = vector.broadcast %cst_15 : f32 to vector<64x81xf32>
    %c0_i32 = arith.constant 0 : i32
    %49 = vector.broadcast %c0_i32 : i32 to vector<1x81xi32>
    %50 = arith.cmpi sge, %3, %49 : vector<1x81xi32>
    %c9_i32 = arith.constant 9 : i32
    %51 = vector.broadcast %c9_i32 : i32 to vector<1x81xi32>
    %52 = arith.cmpi slt, %3, %51 : vector<1x81xi32>
    %53 = arith.andi %50, %52 : vector<1x81xi1>
    %cst_16 = arith.constant 0xFF800000 : f32
    %54 = vector.shape_cast %53 : vector<1x81xi1> to vector<1x81xi1>
    %55 = vector.broadcast %54 : vector<1x81xi1> to vector<64x81xi1>
    %56 = vector.broadcast %cst_16 : f32 to vector<64x81xf32>
    %57 = arith.select %55, %47, %56 : vector<64x81xi1>, vector<64x81xf32>
    %cst_17 = arith.constant dense<0xFF800000> : vector<64xf32>
    %58 = vector.multi_reduction <maximumf>, %57, %cst_17 [1] : vector<64x81xf32> to vector<64xf32>
    %59 = vector.shape_cast %58 : vector<64xf32> to vector<64x1xf32>
    %60 = vector.broadcast %59 : vector<64x1xf32> to vector<64x81xf32>
    %61 = arith.subf %57, %60 : vector<64x81xf32>
    %62 = math.exp %61 : vector<64x81xf32>
    %cst_18 = arith.constant dense<0.000000e+00> : vector<64xf32>
    %63 = vector.multi_reduction <add>, %62, %cst_18 [1] : vector<64x81xf32> to vector<64xf32>
    %64 = vector.shape_cast %63 : vector<64xf32> to vector<64x1xf32>
    %65 = tpu.reciprocal %64 : vector<64x1xf32> -> vector<64x1xf32>
    %66 = vector.broadcast %65 : vector<64x1xf32> to vector<64x81xf32>
    %67 = arith.mulf %62, %66 : vector<64x81xf32>
    %68 = vector.shape_cast %53 : vector<1x81xi1> to vector<1x81xi1>
    %69 = vector.broadcast %68 : vector<1x81xi1> to vector<64x81xi1>
    %70 = arith.select %69, %67, %48 : vector<64x81xi1>, vector<64x81xf32>
    %c9_i32_19 = arith.constant 9 : i32
    %71 = vector.broadcast %c9_i32_19 : i32 to vector<1x81xi32>
    %72 = arith.cmpi sge, %3, %71 : vector<1x81xi32>
    %c18_i32 = arith.constant 18 : i32
    %73 = vector.broadcast %c18_i32 : i32 to vector<1x81xi32>
    %74 = arith.cmpi slt, %3, %73 : vector<1x81xi32>
    %75 = arith.andi %72, %74 : vector<1x81xi1>
    %cst_20 = arith.constant 0xFF800000 : f32
    %76 = vector.shape_cast %75 : vector<1x81xi1> to vector<1x81xi1>
    %77 = vector.broadcast %76 : vector<1x81xi1> to vector<64x81xi1>
    %78 = vector.broadcast %cst_20 : f32 to vector<64x81xf32>
    %79 = arith.select %77, %47, %78 : vector<64x81xi1>, vector<64x81xf32>
    %cst_21 = arith.constant dense<0xFF800000> : vector<64xf32>
    %80 = vector.multi_reduction <maximumf>, %79, %cst_21 [1] : vector<64x81xf32> to vector<64xf32>
    %81 = vector.shape_cast %80 : vector<64xf32> to vector<64x1xf32>
    %82 = vector.broadcast %81 : vector<64x1xf32> to vector<64x81xf32>
    %83 = arith.subf %79, %82 : vector<64x81xf32>
    %84 = math.exp %83 : vector<64x81xf32>
    %cst_22 = arith.constant dense<0.000000e+00> : vector<64xf32>
    %85 = vector.multi_reduction <add>, %84, %cst_22 [1] : vector<64x81xf32> to vector<64xf32>
    %86 = vector.shape_cast %85 : vector<64xf32> to vector<64x1xf32>
    %87 = tpu.reciprocal %86 : vector<64x1xf32> -> vector<64x1xf32>
    %88 = vector.broadcast %87 : vector<64x1xf32> to vector<64x81xf32>
    %89 = arith.mulf %84, %88 : vector<64x81xf32>
    %90 = vector.shape_cast %75 : vector<1x81xi1> to vector<1x81xi1>
    %91 = vector.broadcast %90 : vector<1x81xi1> to vector<64x81xi1>
    %92 = arith.select %91, %89, %70 : vector<64x81xi1>, vector<64x81xf32>
    %c18_i32_23 = arith.constant 18 : i32
    %93 = vector.broadcast %c18_i32_23 : i32 to vector<1x81xi32>
    %94 = arith.cmpi sge, %3, %93 : vector<1x81xi32>
    %c27_i32 = arith.constant 27 : i32
    %95 = vector.broadcast %c27_i32 : i32 to vector<1x81xi32>
    %96 = arith.cmpi slt, %3, %95 : vector<1x81xi32>
    %97 = arith.andi %94, %96 : vector<1x81xi1>
    %cst_24 = arith.constant 0xFF800000 : f32
    %98 = vector.shape_cast %97 : vector<1x81xi1> to vector<1x81xi1>
    %99 = vector.broadcast %98 : vector<1x81xi1> to vector<64x81xi1>
    %100 = vector.broadcast %cst_24 : f32 to vector<64x81xf32>
    %101 = arith.select %99, %47, %100 : vector<64x81xi1>, vector<64x81xf32>
    %cst_25 = arith.constant dense<0xFF800000> : vector<64xf32>
    %102 = vector.multi_reduction <maximumf>, %101, %cst_25 [1] : vector<64x81xf32> to vector<64xf32>
    %103 = vector.shape_cast %102 : vector<64xf32> to vector<64x1xf32>
    %104 = vector.broadcast %103 : vector<64x1xf32> to vector<64x81xf32>
    %105 = arith.subf %101, %104 : vector<64x81xf32>
    %106 = math.exp %105 : vector<64x81xf32>
    %cst_26 = arith.constant dense<0.000000e+00> : vector<64xf32>
    %107 = vector.multi_reduction <add>, %106, %cst_26 [1] : vector<64x81xf32> to vector<64xf32>
    %108 = vector.shape_cast %107 : vector<64xf32> to vector<64x1xf32>
    %109 = tpu.reciprocal %108 : vector<64x1xf32> -> vector<64x1xf32>
    %110 = vector.broadcast %109 : vector<64x1xf32> to vector<64x81xf32>
    %111 = arith.mulf %106, %110 : vector<64x81xf32>
    %112 = vector.shape_cast %97 : vector<1x81xi1> to vector<1x81xi1>
    %113 = vector.broadcast %112 : vector<1x81xi1> to vector<64x81xi1>
    %114 = arith.select %113, %111, %92 : vector<64x81xi1>, vector<64x81xf32>
    %c27_i32_27 = arith.constant 27 : i32
    %115 = vector.broadcast %c27_i32_27 : i32 to vector<1x81xi32>
    %116 = arith.cmpi sge, %3, %115 : vector<1x81xi32>
    %c36_i32 = arith.constant 36 : i32
    %117 = vector.broadcast %c36_i32 : i32 to vector<1x81xi32>
    %118 = arith.cmpi slt, %3, %117 : vector<1x81xi32>
    %119 = arith.andi %116, %118 : vector<1x81xi1>
    %cst_28 = arith.constant 0xFF800000 : f32
    %120 = vector.shape_cast %119 : vector<1x81xi1> to vector<1x81xi1>
    %121 = vector.broadcast %120 : vector<1x81xi1> to vector<64x81xi1>
    %122 = vector.broadcast %cst_28 : f32 to vector<64x81xf32>
    %123 = arith.select %121, %47, %122 : vector<64x81xi1>, vector<64x81xf32>
    %cst_29 = arith.constant dense<0xFF800000> : vector<64xf32>
    %124 = vector.multi_reduction <maximumf>, %123, %cst_29 [1] : vector<64x81xf32> to vector<64xf32>
    %125 = vector.shape_cast %124 : vector<64xf32> to vector<64x1xf32>
    %126 = vector.broadcast %125 : vector<64x1xf32> to vector<64x81xf32>
    %127 = arith.subf %123, %126 : vector<64x81xf32>
    %128 = math.exp %127 : vector<64x81xf32>
    %cst_30 = arith.constant dense<0.000000e+00> : vector<64xf32>
    %129 = vector.multi_reduction <add>, %128, %cst_30 [1] : vector<64x81xf32> to vector<64xf32>
    %130 = vector.shape_cast %129 : vector<64xf32> to vector<64x1xf32>
    %131 = tpu.reciprocal %130 : vector<64x1xf32> -> vector<64x1xf32>
    %132 = vector.broadcast %131 : vector<64x1xf32> to vector<64x81xf32>
    %133 = arith.mulf %128, %132 : vector<64x81xf32>
    %134 = vector.shape_cast %119 : vector<1x81xi1> to vector<1x81xi1>
    %135 = vector.broadcast %134 : vector<1x81xi1> to vector<64x81xi1>
    %136 = arith.select %135, %133, %114 : vector<64x81xi1>, vector<64x81xf32>
    %c36_i32_31 = arith.constant 36 : i32
    %137 = vector.broadcast %c36_i32_31 : i32 to vector<1x81xi32>
    %138 = arith.cmpi sge, %3, %137 : vector<1x81xi32>
    %c45_i32 = arith.constant 45 : i32
    %139 = vector.broadcast %c45_i32 : i32 to vector<1x81xi32>
    %140 = arith.cmpi slt, %3, %139 : vector<1x81xi32>
    %141 = arith.andi %138, %140 : vector<1x81xi1>
    %cst_32 = arith.constant 0xFF800000 : f32
    %142 = vector.shape_cast %141 : vector<1x81xi1> to vector<1x81xi1>
    %143 = vector.broadcast %142 : vector<1x81xi1> to vector<64x81xi1>
    %144 = vector.broadcast %cst_32 : f32 to vector<64x81xf32>
    %145 = arith.select %143, %47, %144 : vector<64x81xi1>, vector<64x81xf32>
    %cst_33 = arith.constant dense<0xFF800000> : vector<64xf32>
    %146 = vector.multi_reduction <maximumf>, %145, %cst_33 [1] : vector<64x81xf32> to vector<64xf32>
    %147 = vector.shape_cast %146 : vector<64xf32> to vector<64x1xf32>
    %148 = vector.broadcast %147 : vector<64x1xf32> to vector<64x81xf32>
    %149 = arith.subf %145, %148 : vector<64x81xf32>
    %150 = math.exp %149 : vector<64x81xf32>
    %cst_34 = arith.constant dense<0.000000e+00> : vector<64xf32>
    %151 = vector.multi_reduction <add>, %150, %cst_34 [1] : vector<64x81xf32> to vector<64xf32>
    %152 = vector.shape_cast %151 : vector<64xf32> to vector<64x1xf32>
    %153 = tpu.reciprocal %152 : vector<64x1xf32> -> vector<64x1xf32>
    %154 = vector.broadcast %153 : vector<64x1xf32> to vector<64x81xf32>
    %155 = arith.mulf %150, %154 : vector<64x81xf32>
    %156 = vector.shape_cast %141 : vector<1x81xi1> to vector<1x81xi1>
    %157 = vector.broadcast %156 : vector<1x81xi1> to vector<64x81xi1>
    %158 = arith.select %157, %155, %136 : vector<64x81xi1>, vector<64x81xf32>
    %c45_i32_35 = arith.constant 45 : i32
    %159 = vector.broadcast %c45_i32_35 : i32 to vector<1x81xi32>
    %160 = arith.cmpi sge, %3, %159 : vector<1x81xi32>
    %c54_i32 = arith.constant 54 : i32
    %161 = vector.broadcast %c54_i32 : i32 to vector<1x81xi32>
    %162 = arith.cmpi slt, %3, %161 : vector<1x81xi32>
    %163 = arith.andi %160, %162 : vector<1x81xi1>
    %cst_36 = arith.constant 0xFF800000 : f32
    %164 = vector.shape_cast %163 : vector<1x81xi1> to vector<1x81xi1>
    %165 = vector.broadcast %164 : vector<1x81xi1> to vector<64x81xi1>
    %166 = vector.broadcast %cst_36 : f32 to vector<64x81xf32>
    %167 = arith.select %165, %47, %166 : vector<64x81xi1>, vector<64x81xf32>
    %cst_37 = arith.constant dense<0xFF800000> : vector<64xf32>
    %168 = vector.multi_reduction <maximumf>, %167, %cst_37 [1] : vector<64x81xf32> to vector<64xf32>
    %169 = vector.shape_cast %168 : vector<64xf32> to vector<64x1xf32>
    %170 = vector.broadcast %169 : vector<64x1xf32> to vector<64x81xf32>
    %171 = arith.subf %167, %170 : vector<64x81xf32>
    %172 = math.exp %171 : vector<64x81xf32>
    %cst_38 = arith.constant dense<0.000000e+00> : vector<64xf32>
    %173 = vector.multi_reduction <add>, %172, %cst_38 [1] : vector<64x81xf32> to vector<64xf32>
    %174 = vector.shape_cast %173 : vector<64xf32> to vector<64x1xf32>
    %175 = tpu.reciprocal %174 : vector<64x1xf32> -> vector<64x1xf32>
    %176 = vector.broadcast %175 : vector<64x1xf32> to vector<64x81xf32>
    %177 = arith.mulf %172, %176 : vector<64x81xf32>
    %178 = vector.shape_cast %163 : vector<1x81xi1> to vector<1x81xi1>
    %179 = vector.broadcast %178 : vector<1x81xi1> to vector<64x81xi1>
    %180 = arith.select %179, %177, %158 : vector<64x81xi1>, vector<64x81xf32>
    %c54_i32_39 = arith.constant 54 : i32
    %181 = vector.broadcast %c54_i32_39 : i32 to vector<1x81xi32>
    %182 = arith.cmpi sge, %3, %181 : vector<1x81xi32>
    %c63_i32 = arith.constant 63 : i32
    %183 = vector.broadcast %c63_i32 : i32 to vector<1x81xi32>
    %184 = arith.cmpi slt, %3, %183 : vector<1x81xi32>
    %185 = arith.andi %182, %184 : vector<1x81xi1>
    %cst_40 = arith.constant 0xFF800000 : f32
    %186 = vector.shape_cast %185 : vector<1x81xi1> to vector<1x81xi1>
    %187 = vector.broadcast %186 : vector<1x81xi1> to vector<64x81xi1>
    %188 = vector.broadcast %cst_40 : f32 to vector<64x81xf32>
    %189 = arith.select %187, %47, %188 : vector<64x81xi1>, vector<64x81xf32>
    %cst_41 = arith.constant dense<0xFF800000> : vector<64xf32>
    %190 = vector.multi_reduction <maximumf>, %189, %cst_41 [1] : vector<64x81xf32> to vector<64xf32>
    %191 = vector.shape_cast %190 : vector<64xf32> to vector<64x1xf32>
    %192 = vector.broadcast %191 : vector<64x1xf32> to vector<64x81xf32>
    %193 = arith.subf %189, %192 : vector<64x81xf32>
    %194 = math.exp %193 : vector<64x81xf32>
    %cst_42 = arith.constant dense<0.000000e+00> : vector<64xf32>
    %195 = vector.multi_reduction <add>, %194, %cst_42 [1] : vector<64x81xf32> to vector<64xf32>
    %196 = vector.shape_cast %195 : vector<64xf32> to vector<64x1xf32>
    %197 = tpu.reciprocal %196 : vector<64x1xf32> -> vector<64x1xf32>
    %198 = vector.broadcast %197 : vector<64x1xf32> to vector<64x81xf32>
    %199 = arith.mulf %194, %198 : vector<64x81xf32>
    %200 = vector.shape_cast %185 : vector<1x81xi1> to vector<1x81xi1>
    %201 = vector.broadcast %200 : vector<1x81xi1> to vector<64x81xi1>
    %202 = arith.select %201, %199, %180 : vector<64x81xi1>, vector<64x81xf32>
    %c63_i32_43 = arith.constant 63 : i32
    %203 = vector.broadcast %c63_i32_43 : i32 to vector<1x81xi32>
    %204 = arith.cmpi sge, %3, %203 : vector<1x81xi32>
    %c72_i32 = arith.constant 72 : i32
    %205 = vector.broadcast %c72_i32 : i32 to vector<1x81xi32>
    %206 = arith.cmpi slt, %3, %205 : vector<1x81xi32>
    %207 = arith.andi %204, %206 : vector<1x81xi1>
    %cst_44 = arith.constant 0xFF800000 : f32
    %208 = vector.shape_cast %207 : vector<1x81xi1> to vector<1x81xi1>
    %209 = vector.broadcast %208 : vector<1x81xi1> to vector<64x81xi1>
    %210 = vector.broadcast %cst_44 : f32 to vector<64x81xf32>
    %211 = arith.select %209, %47, %210 : vector<64x81xi1>, vector<64x81xf32>
    %cst_45 = arith.constant dense<0xFF800000> : vector<64xf32>
    %212 = vector.multi_reduction <maximumf>, %211, %cst_45 [1] : vector<64x81xf32> to vector<64xf32>
    %213 = vector.shape_cast %212 : vector<64xf32> to vector<64x1xf32>
    %214 = vector.broadcast %213 : vector<64x1xf32> to vector<64x81xf32>
    %215 = arith.subf %211, %214 : vector<64x81xf32>
    %216 = math.exp %215 : vector<64x81xf32>
    %cst_46 = arith.constant dense<0.000000e+00> : vector<64xf32>
    %217 = vector.multi_reduction <add>, %216, %cst_46 [1] : vector<64x81xf32> to vector<64xf32>
    %218 = vector.shape_cast %217 : vector<64xf32> to vector<64x1xf32>
    %219 = tpu.reciprocal %218 : vector<64x1xf32> -> vector<64x1xf32>
    %220 = vector.broadcast %219 : vector<64x1xf32> to vector<64x81xf32>
    %221 = arith.mulf %216, %220 : vector<64x81xf32>
    %222 = vector.shape_cast %207 : vector<1x81xi1> to vector<1x81xi1>
    %223 = vector.broadcast %222 : vector<1x81xi1> to vector<64x81xi1>
    %224 = arith.select %223, %221, %202 : vector<64x81xi1>, vector<64x81xf32>
    %c72_i32_47 = arith.constant 72 : i32
    %225 = vector.broadcast %c72_i32_47 : i32 to vector<1x81xi32>
    %226 = arith.cmpi sge, %3, %225 : vector<1x81xi32>
    %c81_i32 = arith.constant 81 : i32
    %227 = vector.broadcast %c81_i32 : i32 to vector<1x81xi32>
    %228 = arith.cmpi slt, %3, %227 : vector<1x81xi32>
    %229 = arith.andi %226, %228 : vector<1x81xi1>
    %cst_48 = arith.constant 0xFF800000 : f32
    %230 = vector.shape_cast %229 : vector<1x81xi1> to vector<1x81xi1>
    %231 = vector.broadcast %230 : vector<1x81xi1> to vector<64x81xi1>
    %232 = vector.broadcast %cst_48 : f32 to vector<64x81xf32>
    %233 = arith.select %231, %47, %232 : vector<64x81xi1>, vector<64x81xf32>
    %cst_49 = arith.constant dense<0xFF800000> : vector<64xf32>
    %234 = vector.multi_reduction <maximumf>, %233, %cst_49 [1] : vector<64x81xf32> to vector<64xf32>
    %235 = vector.shape_cast %234 : vector<64xf32> to vector<64x1xf32>
    %236 = vector.broadcast %235 : vector<64x1xf32> to vector<64x81xf32>
    %237 = arith.subf %233, %236 : vector<64x81xf32>
    %238 = math.exp %237 : vector<64x81xf32>
    %cst_50 = arith.constant dense<0.000000e+00> : vector<64xf32>
    %239 = vector.multi_reduction <add>, %238, %cst_50 [1] : vector<64x81xf32> to vector<64xf32>
    %240 = vector.shape_cast %239 : vector<64xf32> to vector<64x1xf32>
    %241 = tpu.reciprocal %240 : vector<64x1xf32> -> vector<64x1xf32>
    %242 = vector.broadcast %241 : vector<64x1xf32> to vector<64x81xf32>
    %243 = arith.mulf %238, %242 : vector<64x81xf32>
    %244 = vector.shape_cast %229 : vector<1x81xi1> to vector<1x81xi1>
    %245 = vector.broadcast %244 : vector<1x81xi1> to vector<64x81xi1>
    %246 = arith.select %245, %243, %224 : vector<64x81xi1>, vector<64x81xf32>
    %c0_51 = arith.constant 0 : index
    %c0_52 = arith.constant 0 : index
    %247 = vector.load %arg3[%c0_51, %c0_52] : memref<64x81xf32, #tpu.memory_space<vmem>>, vector<64x81xf32>
    tpu.vector_store %arg3[%c0_51, %c0_52], %246 {strides = array<i32>} : memref<64x81xf32, #tpu.memory_space<vmem>>, vector<64x81xf32>,
    return
  }
}

</mosaic_0001>

<bundles_post_ra>
// kernel: a_call__.1
= control target key start
LH: loop header
LB: loop body
LE: loop exit
PB: predicated region body
PF: predicated region fallthrough
CT: control target
= control target key end

     0   :  { %8 = vsyncpa [#allocation4], 0  ;;  %s1720_s12 = smov [#allocation3]   ;;  %s3232_s0 = inlined_call_operand.vmem [shape: f32[8,25], index: 0, kind: input, shape index: {}]   ;;  %s3233_s1 = inlined_call_operand.vmem [shape: f32[64,200], index: 1, kind: input, shape index: {}]   ;;  %s3234_s2 = inlined_call_operand.hbm [shape: f32[64,1], index: 2, kind: input, shape index: {}]   ;;  %s3235_s3 = inlined_call_operand.vmem [shape: f32[64,81], index: 3, kind: output, shape index: {}]  }
   0x1   :  { %s18_s13 = sshll.u32 %s1720_s12, 4  ;;  %s19_s13 = int_to_ptr.vmem [resolvable:$true] %s18_s13 }
   0x2   :  { %s1706_s14 = scalar_lea.vmem %s19_s13, 1024  ;;  %p1711_p1 = scmp.lt.s32.totalorder %s19_s13, %s19_s13 }
   0x3   :  { %p1707_p0 = scmp.ne.s32.totalorder %s19_s13, %s1706_s14  ;;  %p1712_p2 = scmp.lt.s32.totalorder %s1706_s14, %s1706_s14 }
   0x5   :  { %p1713_p3 = por %p1712_p2, %p1711_p1 }
   0x7   :  { %p1714_p4 = pnand %p1713_p3, %p1707_p0 }
   0x9   :  { %1717 = shalt.err (!%p1714_p4)
}
   0xa   :  { %s1721_s15 = smov 128   ;;  %s1722_s16 = smov 8  }
   0xb   :  { %24 = dma.hbm_to_vmem [thread:$0]  %s3234_s2, 1024, %s19_s13, [#allocation4], %s1721_s15, %s1721_s15, %s1722_s16  }
   0xc   :  { %1718 = dma.done.wait [#allocation4], 1024  }
   0xd   :  { %1719 = vsyncadd [#allocation4], 4294966272  ;;  %v1723_v0 = vmov 0.0   ;;  %v52_v1 = vld [vmem:[%s3232_s0] sm:$0xff]  ;;  %s1724_s21 = smov 40   ;;  %s1725_s22 = smov 48   ;;  %v53_v60 = vlaneseq }
   0xe   :  { %55 = vst [vmem:[#allocation2] sm:$0xff] %v1723_v0  ;;  %223 = vmatprep.subr.mxu0 %v1723_v0  ;;  %1331 = vmatprep.subr.mxu1 %v1723_v0  ;;  %s1726_s23 = smov 44   ;;  %s1727_s2 = smov 52   ;;  %vm60_vm0 = vcmask 367936   ;;  %vm65_vm1 = vcmask 441736   ;;  %vm70_vm2 = vcmask 515536  }
   0xf   :  { %57 = vrot.lane.b32.xlu0 %v52_v1, %s1724_s21  ;;  %67 = vrot.lane.b32.xlu1 %v52_v1, %s1725_s22  ;;  %s1728_s24 = smov 56   ;;  %vm75_vm3 = vcmask 589336   ;;  %vm80_vm4 = vcmask 663136   ;;  %s1729_s0 = smov 117   ;;  %v29_v12 = vld [vmem:[%s3233_s1 + $0x8] sm:$0xff]  ;;  %vm198_vm5 = vcmask 588800  }
  0x10   :  { %s1730_s25 = smov 116   ;;  %s1731_s26 = smov 119   ;;  %v37_v13 = vld [vmem:[%s3233_s1 + $0x48] sm:$0xff]  ;;  %1323 = vmatprep.mubr.msk.f32.mxu0 %vm198_vm5, %v29_v12  ;;  %v45_v26 = vld [vmem:[#allocation3 + $0x8] sm:$0xff]  ;;  %v1746_v28 = vmov 0   ;;  %v46_v29 = vld [vmem:[#allocation3 + $0x10] sm:$0xff] }
  0x11   :  { %s1732_s27 = smov 118   ;;  %s1733_s28 = smov 125   ;;  %1327 = vmatprep.mubr.msk.f32.mxu1 %vm198_vm5, %v37_v13  ;;  %v44_v27 = vld [vmem:[#allocation3] sm:$0xff]  ;;  %1409 = vset.pattern.permute.xlu1 %v1746_v28  ;;  %v47_v30 = vld [vmem:[#allocation3 + $0x18] sm:$0xff]  ;;  %v49_v32 = vld [vmem:[#allocation3 + $0x28] sm:$0xff]  ;;  %v1923_v62 = vand.u32 127, %v53_v60 }
  0x12   :  { %s1734_s29 = smov 120   ;;  %s1735_s30 = smov 127   ;;  %1408 = vset.pattern.permute.xlu0 %v1746_v28  ;;  %v48_v31 = vld [vmem:[#allocation3 + $0x20] sm:$0xff]  ;;  %v50_v33 = vld [vmem:[#allocation3 + $0x30] sm:$0xff]  ;;  %v51_v34 = vld [vmem:[#allocation3 + $0x38] sm:$0xff]  ;;  %vm341_vm9 = vcmask 662528  }
  0x13   :  { %62 = vrot.lane.b32.xlu0 %v52_v1, %s1726_s23  ;;  %72 = vrot.lane.b32.xlu1 %v52_v1, %s1727_s2  ;;  %s1736_s4 = smov 126   ;;  %s1737_s5 = smov 106   ;;  %v28_v43 = vld [vmem:[%s3233_s1] sm:$0xff]  ;;  %v31_v46 = vld [vmem:[%s3233_s1 + $0x18] sm:$0xff]  ;;  %3314 = vst [vmem:[#allocation6_spill] sm:$0xff] %v1923_v62  ;;  %vm438_vm6 = vcmp.ge.s32.totalorder %v1923_v62, 9 }
  0x14   :  { %s1738_s6 = smov 101   ;;  %s1739_s7 = smov 108   ;;  %v36_v44 = vld [vmem:[%s3233_s1 + $0x40] sm:$0xff]  ;;  %v39_v47 = vld [vmem:[%s3233_s1 + $0x58] sm:$0xff]  ;;  %v30_v48 = vld [vmem:[%s3233_s1 + $0x10] sm:$0xff]  ;;  %vm439_vm7 = vcmp.lt.s32.totalorder %v1923_v62, 18 }
  0x15   :  { %s1740_s8 = smov 107   ;;  %s1741_s9 = smov 110   ;;  %v38_v49 = vld [vmem:[%s3233_s1 + $0x50] sm:$0xff]  ;;  %v33_v50 = vld [vmem:[%s3233_s1 + $0x28] sm:$0xff]  ;;  %v32_v52 = vld [vmem:[%s3233_s1 + $0x20] sm:$0xff]  ;;  %vm329_vm8 = vcmp.lt.s32.totalorder %v1923_v62, 9 }
  0x16   :  { %s1742_s10 = smov 109   ;;  %s1743_s11 = smov 124   ;;  %v41_v51 = vld [vmem:[%s3233_s1 + $0x68] sm:$0xff]  ;;  %v40_v53 = vld [vmem:[%s3233_s1 + $0x60] sm:$0xff]  ;;  %v35_v54 = vld [vmem:[%s3233_s1 + $0x38] sm:$0xff]  ;;  %vm547_vm11 = vcmp.ge.s32.totalorder %v1923_v62, 18 }
  0x17   :  { %77 = vrot.lane.b32.xlu0 %v52_v1, %s1728_s24  ;;  %s1744_s12 = smov 115   ;;  %s1745_s13 = smov 100   ;;  %v43_v55 = vld [vmem:[%s3233_s1 + $0x78] sm:$0xff]  ;;  %v34_v56 = vld [vmem:[%s3233_s1 + $0x30] sm:$0xff]  ;;  %vm1934_vm10 = vmand %vm438_vm6, %vm439_vm7  ;;  %vm548_vm12 = vcmp.lt.s32.totalorder %v1923_v62, 27  ;;  %vm656_vm14 = vcmp.ge.s32.totalorder %v1923_v62, 27 }
  0x18   :  { %v42_v57 = vld [vmem:[%s3233_s1 + $0x70] sm:$0xff]  ;;  %vm1994_vm13 = vmand %vm547_vm11, %vm548_vm12  ;;  %vm657_vm15 = vcmp.lt.s32.totalorder %v1923_v62, 36  ;;  %vm983_vm7 = vcmp.ge.s32.totalorder %v1923_v62, 54  ;;  %vm984_vm11 = vcmp.lt.s32.totalorder %v1923_v62, 63 }
  0x19   :  { %vm2130_vm12 = vmand %vm983_vm7, %vm984_vm11 }
  0x81   :  { %v58_v2 = vpop.permute.xlu0 %57  ;;  %v68_v3 = vpop.permute.xlu1 %67 }
  0x82   :  { %61 = vst.msk [vmem:[#allocation2] sm:$0xff] %vm60_vm0, %v58_v2  ;;  %vm2028_vm0 = vmand %vm656_vm14, %vm657_vm15  ;;  %vm1092_vm14 = vcmp.ge.s32.totalorder %v1923_v62, 63  ;;  %vm1093_vm15 = vcmp.lt.s32.totalorder %v1923_v62, 72 }
  0x85   :  { %v63_v4 = vpop.permute.xlu0 %62  ;;  %v73_v5 = vpop.permute.xlu1 %72 }
  0x86   :  { %66 = vst.msk [vmem:[#allocation2] sm:$0xff] %vm65_vm1, %v63_v4  ;;  %vm765_vm1 = vcmp.ge.s32.totalorder %v1923_v62, 36 }
  0x87   :  { %71 = vst.msk [vmem:[#allocation2] sm:$0xff] %vm70_vm2, %v68_v3  ;;  %vm766_vm2 = vcmp.lt.s32.totalorder %v1923_v62, 45 }
  0x88   :  { %76 = vst.msk [vmem:[#allocation2] sm:$0xff] %vm75_vm3, %v73_v5  ;;  %vm2062_vm3 = vmand %vm765_vm1, %vm766_vm2  ;;  %vm1201_vm2 = vcmp.ge.s32.totalorder %v1923_v62, 72 }
  0x89   :  { %v78_v6 = vpop.permute.xlu0 %77  ;;  %vm2164_vm1 = vmand %vm1092_vm14, %vm1093_vm15 }
  0x8a   :  { %81 = vst.msk [vmem:[#allocation2] sm:$0xff] %vm80_vm4, %v78_v6  ;;  %vm874_vm4 = vcmp.ge.s32.totalorder %v1923_v62, 45 }
  0x91   :  { %v1776_v7 = vld [vmem:[#allocation2] sm:$0xff] }
  0x92   :  { %102 = vrot.lane.b32.xlu0 %v1776_v7, %s1729_s0  ;;  %105 = vrot.lane.b32.xlu1 %v1776_v7, %s1730_s25 }
  0x96   :  { %96 = vrot.lane.b32.xlu0 %v1776_v7, %s1731_s26  ;;  %99 = vrot.lane.b32.xlu1 %v1776_v7, %s1732_s27 }
  0x9a   :  { %90 = vrot.lane.b32.xlu0 %v1776_v7, %s1733_s28  ;;  %129 = vrot.lane.b32.xlu1 %v1776_v7, %s1734_s29 }
  0x9e   :  { %84 = vrot.lane.b32.xlu0 %v1776_v7, %s1735_s30  ;;  %87 = vrot.lane.b32.xlu1 %v1776_v7, %s1736_s4 }
  0xa2   :  { %123 = vrot.lane.b32.xlu0 %v1776_v7, %s1737_s5  ;;  %126 = vrot.lane.b32.xlu1 %v1776_v7, %s1738_s6 }
  0xa6   :  { %117 = vrot.lane.b32.xlu0 %v1776_v7, %s1739_s7  ;;  %120 = vrot.lane.b32.xlu1 %v1776_v7, %s1740_s8 }
  0xaa   :  { %111 = vrot.lane.b32.xlu0 %v1776_v7, %s1741_s9  ;;  %114 = vrot.lane.b32.xlu1 %v1776_v7, %s1742_s10 }
  0xae   :  { %93 = vrot.lane.b32.xlu0 %v1776_v7, %s1743_s11  ;;  %108 = vrot.lane.b32.xlu1 %v1776_v7, %s1744_s12 }
 0x104   :  { %v103_v8 = vpop.permute.xlu0 %102  ;;  %v106_v9 = vpop.permute.xlu1 %105 }
 0x105   :  { %145 = vrot.lane.b32.xlu0 %v103_v8, %s1745_s13  ;;  %147 = vrot.lane.b32.xlu1 %v106_v9, %s1745_s13 }
 0x108   :  { %v1794_v10 = vpop.permute.xlu0 %96  ;;  %v100_v11 = vpop.permute.xlu1 %99 }
 0x109   :  { %141 = vrot.lane.b32.xlu0 %v1794_v10, %s1745_s13  ;;  %143 = vrot.lane.b32.xlu1 %v100_v11, %s1745_s13 }
 0x10c   :  { %v1805_v14 = vpop.permute.xlu0 %90  ;;  %v130_v15 = vpop.permute.xlu1 %129 }
 0x10d   :  { %137 = vrot.lane.b32.xlu0 %v1805_v14, %s1745_s13  ;;  %139 = vrot.lane.b32.xlu1 %v130_v15, %s1745_s13 }
 0x110   :  { %v1808_v16 = vpop.permute.xlu0 %84  ;;  %v1810_v17 = vpop.permute.xlu1 %87 }
 0x111   :  { %133 = vrot.lane.b32.xlu0 %v1808_v16, %s1745_s13  ;;  %135 = vrot.lane.b32.xlu1 %v1810_v17, %s1745_s13 }
 0x114   :  { %v124_v18 = vpop.permute.xlu0 %123  ;;  %v127_v19 = vpop.permute.xlu1 %126 }
 0x115   :  { %131 = vrot.lane.b32.xlu1 %v1776_v7, %s1745_s13  ;;  %224 = vmatpush1.msra.mxu0 %v127_v19 }
 0x116   :  { %1356 = vmatpush1.msra.mxu1 %v127_v19  ;;  %225 = vmatprep.subr.mxu0 %v1723_v0 }
 0x117   :  { %1332 = vmatprep.subr.mxu1 %v1723_v0  ;;  %226 = vmatpush1.msra.mxu0 %v124_v18 }
 0x118   :  { %1357 = vmatpush1.msra.mxu1 %v124_v18  ;;  %v118_v20 = vpop.permute.xlu0 %117  ;;  %227 = vmatprep.subr.mxu0 %v1723_v0  ;;  %v121_v21 = vpop.permute.xlu1 %120 }
 0x119   :  { %1333 = vmatprep.subr.mxu1 %v1723_v0  ;;  %228 = vmatpush1.msra.mxu0 %v121_v21 }
 0x11a   :  { %1358 = vmatpush1.msra.mxu1 %v121_v21  ;;  %229 = vmatprep.subr.mxu0 %v1723_v0 }
 0x11b   :  { %1334 = vmatprep.subr.mxu1 %v1723_v0  ;;  %230 = vmatpush1.msra.mxu0 %v118_v20 }
 0x11c   :  { %1359 = vmatpush1.msra.mxu1 %v118_v20  ;;  %231 = vmatprep.subr.mxu0 %v1723_v0  ;;  %v115_v22 = vpop.permute.xlu1 %114  ;;  %v112_v23 = vpop.permute.xlu0 %111 }
 0x11d   :  { %1335 = vmatprep.subr.mxu1 %v1723_v0  ;;  %232 = vmatpush1.msra.mxu0 %v115_v22 }
 0x11e   :  { %1360 = vmatpush1.msra.mxu1 %v115_v22  ;;  %233 = vmatprep.subr.mxu0 %v1723_v0 }
 0x11f   :  { %1336 = vmatprep.subr.mxu1 %v1723_v0  ;;  %234 = vmatpush1.msra.mxu0 %v112_v23 }
 0x120   :  { %1361 = vmatpush1.msra.mxu1 %v112_v23  ;;  %235 = vmatprep.subr.mxu0 %v1723_v0  ;;  %v109_v24 = vpop.permute.xlu1 %108  ;;  %v94_v25 = vpop.permute.xlu0 %93 }
 0x121   :  { %1337 = vmatprep.subr.mxu1 %v1723_v0  ;;  %236 = vmatpush1.msra.mxu0 %v109_v24 }
 0x122   :  { %1362 = vmatpush1.msra.mxu1 %v109_v24  ;;  %237 = vmatprep.subr.mxu0 %v1723_v0 }
 0x123   :  { %1338 = vmatprep.subr.mxu1 %v1723_v0  ;;  %238 = vmatpush1.msra.mxu0 %v106_v9 }
 0x124   :  { %1363 = vmatpush1.msra.mxu1 %v106_v9  ;;  %239 = vmatprep.subr.mxu0 %v1723_v0 }
 0x125   :  { %1339 = vmatprep.subr.mxu1 %v1723_v0  ;;  %240 = vmatpush1.msra.mxu0 %v103_v8 }
 0x126   :  { %1364 = vmatpush1.msra.mxu1 %v103_v8  ;;  %241 = vmatprep.subr.mxu0 %v1723_v0 }
 0x127   :  { %1340 = vmatprep.subr.mxu1 %v1723_v0  ;;  %242 = vmatpush1.msra.mxu0 %v100_v11 }
 0x128   :  { %1365 = vmatpush1.msra.mxu1 %v100_v11  ;;  %243 = vmatprep.subr.mxu0 %v1723_v0 }
 0x129   :  { %1341 = vmatprep.subr.mxu1 %v1723_v0  ;;  %244 = vmatpush1.msra.mxu0 %v1794_v10 }
 0x12a   :  { %1366 = vmatpush1.msra.mxu1 %v1794_v10  ;;  %245 = vmatprep.subr.mxu0 %v1723_v0 }
 0x12b   :  { %1342 = vmatprep.subr.mxu1 %v1723_v0  ;;  %246 = vmatpush1.msra.mxu0 %v94_v25 }
 0x12c   :  { %1367 = vmatpush1.msra.mxu1 %v94_v25  ;;  %247 = vmatprep.subr.mxu0 %v1723_v0 }
 0x12d   :  { %1343 = vmatprep.subr.mxu1 %v1723_v0  ;;  %248 = vmatpush1.msra.mxu0 %v1805_v14 }
 0x12e   :  { %1368 = vmatpush1.msra.mxu1 %v1805_v14  ;;  %249 = vmatprep.subr.mxu0 %v1723_v0 }
 0x12f   :  { %1344 = vmatprep.subr.mxu1 %v1723_v0  ;;  %250 = vmatpush1.msra.mxu0 %v1810_v17 }
 0x130   :  { %1369 = vmatpush1.msra.mxu1 %v1810_v17  ;;  %251 = vmatprep.subr.mxu0 %v1723_v0 }
 0x131   :  { %1345 = vmatprep.subr.mxu1 %v1723_v0  ;;  %252 = vmatpush1.msra.mxu0 %v1808_v16 }
 0x132   :  { %1370 = vmatpush1.msra.mxu1 %v1808_v16  ;;  %253 = vmatprep.subr.mxu0 %v1723_v0 }
 0x133   :  { %1346 = vmatprep.subr.mxu1 %v1723_v0  ;;  %254 = vmatpush1.msra.mxu0 %v1776_v7 }
 0x134   :  { %1371 = vmatpush1.msra.mxu1 %v1776_v7  ;;  %269 = vmatprep.subr.mxu0 %v1723_v0  ;;  %v3315_v7 = vmov 0 }
 0x135   :  { %1347 = vmatprep.subr.mxu1 %v1723_v0  ;;  %165 = vperm.xlu1 %1409, %v45_v26   ;;  %v3316_v7 = vsel %vm1934_vm10, 4294967295, %v3315_v7 }
 0x136   :  { %160 = vperm.xlu0 %1408, %v44_v27   ;;  %3317 = vst [vmem:[#allocation7_spill] sm:$0xff] %v3316_v7 }
 0x139   :  { %170 = vperm.xlu1 %1409, %v46_v29  }
 0x13a   :  { %175 = vperm.xlu0 %1408, %v47_v30  }
 0x13d   :  { %180 = vperm.xlu1 %1409, %v48_v31  }
 0x13e   :  { %185 = vperm.xlu0 %1408, %v49_v32  }
 0x141   :  { %190 = vperm.xlu1 %1409, %v50_v33   ;;  %v3318_v33 = vmov 0 }
 0x142   :  { %195 = vperm.xlu0 %1408, %v51_v34   ;;  %v3319_v33 = vsel %vm1994_vm13, 4294967295, %v3318_v33 }
 0x143   :  { %3320 = vst [vmem:[#allocation8_spill] sm:$0xff] %v3319_v33 }
 0x177   :  { %v146_v35 = vpop.permute.xlu0 %145  ;;  %v148_v36 = vpop.permute.xlu1 %147 }
 0x178   :  { %270 = vmatpush2.msra.mxu0 %v148_v36  ;;  %1372 = vmatpush2.msra.mxu1 %v148_v36 }
 0x179   :  { %271 = vmatprep.subr.mxu0 %v1723_v0  ;;  %1348 = vmatprep.subr.mxu1 %v1723_v0 }
 0x17a   :  { %272 = vmatpush2.msra.mxu0 %v146_v35  ;;  %1373 = vmatpush2.msra.mxu1 %v146_v35 }
 0x17b   :  { %v142_v37 = vpop.permute.xlu0 %141  ;;  %273 = vmatprep.subr.mxu0 %v1723_v0  ;;  %1349 = vmatprep.subr.mxu1 %v1723_v0  ;;  %v144_v38 = vpop.permute.xlu1 %143 }
 0x17c   :  { %274 = vmatpush2.msra.mxu0 %v144_v38  ;;  %1374 = vmatpush2.msra.mxu1 %v144_v38 }
 0x17d   :  { %275 = vmatprep.subr.mxu0 %v1723_v0  ;;  %1350 = vmatprep.subr.mxu1 %v1723_v0 }
 0x17e   :  { %276 = vmatpush2.msra.mxu0 %v142_v37  ;;  %1375 = vmatpush2.msra.mxu1 %v142_v37 }
 0x17f   :  { %v138_v39 = vpop.permute.xlu0 %137  ;;  %277 = vmatprep.subr.mxu0 %v1723_v0  ;;  %1351 = vmatprep.subr.mxu1 %v1723_v0  ;;  %v140_v40 = vpop.permute.xlu1 %139 }
 0x180   :  { %278 = vmatpush2.msra.mxu0 %v140_v40  ;;  %1376 = vmatpush2.msra.mxu1 %v140_v40 }
 0x181   :  { %279 = vmatprep.subr.mxu0 %v1723_v0  ;;  %1352 = vmatprep.subr.mxu1 %v1723_v0 }
 0x182   :  { %280 = vmatpush2.msra.mxu0 %v138_v39  ;;  %1377 = vmatpush2.msra.mxu1 %v138_v39 }
 0x183   :  { %281 = vmatprep.subr.mxu0 %v1723_v0  ;;  %1353 = vmatprep.subr.mxu1 %v1723_v0  ;;  %v136_v41 = vpop.permute.xlu1 %135  ;;  %v134_v42 = vpop.permute.xlu0 %133 }
 0x184   :  { %282 = vmatpush2.msra.mxu0 %v136_v41  ;;  %1378 = vmatpush2.msra.mxu1 %v136_v41 }
 0x185   :  { %283 = vmatprep.subr.mxu0 %v1723_v0  ;;  %1354 = vmatprep.subr.mxu1 %v1723_v0 }
 0x186   :  { %284 = vmatpush2.msra.mxu0 %v134_v42  ;;  %1379 = vmatpush2.msra.mxu1 %v134_v42 }
 0x187   :  { %285 = vmatprep.subr.mxu0 %v1723_v0  ;;  %1355 = vmatprep.subr.mxu1 %v1723_v0  ;;  %v132_v45 = vpop.permute.xlu1 %131 }
 0x188   :  { %286 = vmatpush2.msra.mxu0 %v132_v45  ;;  %1380 = vmatpush2.msra.mxu1 %v132_v45 }
 0x189   :  { %288 = vmatmul.mubr.f32.vlgmr.msra.gmra.mxu0 %v28_v43  ;;  %308 = vmatmul.mubr.f32.vlgmr.msra.gmra.mxu1 %v36_v44  ;;  %v3321_v44 = vmov 0 }
 0x18a   :  { %1324 = vmatprep.mubr.msk.f32.mxu0 %vm198_vm5, %v31_v46  ;;  %1328 = vmatprep.mubr.msk.f32.mxu1 %vm198_vm5, %v39_v47  ;;  %v3322_v44 = vsel %vm2028_vm0, 4294967295, %v3321_v44 }
 0x18b   :  { %3323 = vst [vmem:[#allocation9_spill] sm:$0xff] %v3322_v44 }
 0x18d   :  { %293 = vmatmul.mubr.f32.gmra.mxu0 %v30_v48  ;;  %313 = vmatmul.mubr.f32.gmra.mxu1 %v38_v49 }
 0x18e   :  { %1325 = vmatprep.mubr.msk.f32.mxu0 %vm198_vm5, %v33_v50  ;;  %1329 = vmatprep.mubr.msk.f32.mxu1 %vm198_vm5, %v41_v51 }
 0x191   :  { %298 = vmatmul.mubr.f32.gmra.mxu0 %v32_v52  ;;  %318 = vmatmul.mubr.f32.gmra.mxu1 %v40_v53  ;;  %v3324_v53 = vmov 0 }
 0x192   :  { %1326 = vmatprep.mubr.msk.f32.mxu0 %vm198_vm5, %v35_v54  ;;  %1330 = vmatprep.mubr.msk.f32.mxu1 %vm198_vm5, %v43_v55  ;;  %v3325_v53 = vsel %vm2062_vm3, 4294967295, %v3324_v53  ;;  %vm875_vm5 = vcmp.lt.s32.totalorder %v1923_v62, 54 }
 0x193   :  { %3326 = vst [vmem:[#allocation10_spill] sm:$0xff] %v3325_v53  ;;  %vm2096_vm6 = vmand %vm874_vm4, %vm875_vm5  ;;  %vm1202_vm4 = vcmp.lt.s32.totalorder %v1923_v62, 81 }
 0x194   :  { %vm2198_vm5 = vmand %vm1201_vm2, %vm1202_vm4 }
 0x195   :  { %303 = vmatmul.mubr.f32.gmra.mxu0 %v34_v56  ;;  %323 = vmatmul.mubr.f32.gmra.mxu1 %v42_v57 }
 0x1b0   :  { %v166_v58 = vpop.permute.xlu1 %165 }
 0x1b1   :  { %v161_v59 = vpop.permute.xlu0 %160 }
 0x1b4   :  { %v1921_v61 = vpop.permute.xlu1 %170 }
 0x1b5   :  { %v1925_v63 = vpop.permute.xlu0 %175 }
 0x1b8   :  { %v181_v0 = vpop.permute.xlu1 %180 }
 0x1b9   :  { %v186_v8 = vpop.permute.xlu0 %185 }
 0x249   :  { %v289_v1 = vpop.f32.mrf.mxu0  ;;  %v309_v2 = vpop.f32.mrf.mxu1 }
 0x24a   :  { %v1930_v3 = vadd.f32 %v289_v1, %v161_v59  ;;  %v1932_v4 = vadd.f32 %v309_v2, %v181_v0  ;;  %v3327_v1 = vmov 0 }
 0x24b   :  { %v291_v5 = vpop.f32.mrf.mxu0  ;;  %v311_v6 = vpop.f32.mrf.mxu1  ;;  %v3328_v1 = vsel %vm2096_vm6, 4294967295, %v3327_v1 }
 0x24c   :  { %v1941_v9 = vsel %vm329_vm8, %v1932_v4, -inf  ;;  %v1946_v10 = vsel %vm329_vm8, %v1930_v3, -inf  ;;  %v1951_v11 = vsel %vm1934_vm10, %v1930_v3, -inf  ;;  %v1977_v25 = vsel %vm1934_vm10, %v1932_v4, -inf  ;;  %3329 = vst [vmem:[#allocation11_spill] sm:$0xff] %v3328_v1 }
 0x24d   :  { %v294_v12 = vpop.f32.mrf.mxu0  ;;  %v314_v13 = vpop.f32.mrf.mxu1  ;;  %v354_v14 = vsel %vm341_vm9, %v1941_v9, -inf  ;;  %v342_v15 = vsel %vm341_vm9, %v1946_v10, -inf  ;;  %v451_v20 = vsel %vm341_vm9, %v1951_v11, -inf  ;;  %v463_v31 = vsel %vm341_vm9, %v1977_v25, -inf }
 0x24e   :  { %v1957_v16 = vadd.f32 %v294_v12, %v166_v58  ;;  %v1959_v17 = vadd.f32 %v314_v13, %v186_v8  ;;  %355 = vmax.xlane.f32.xlu0 %v354_v14  ;;  %343 = vmax.xlane.f32.xlu1 %v342_v15  ;;  %v2001_v34 = vsel %vm1994_vm13, %v1930_v3, -inf  ;;  %v2015_v40 = vsel %vm1994_vm13, %v1932_v4, -inf }
 0x24f   :  { %v296_v18 = vpop.f32.mrf.mxu0  ;;  %v316_v19 = vpop.f32.mrf.mxu1  ;;  %v560_v38 = vsel %vm341_vm9, %v2001_v34, -inf  ;;  %v572_v42 = vsel %vm341_vm9, %v2015_v40, -inf  ;;  %v2035_v45 = vsel %vm2028_vm0, %v1930_v3, -inf  ;;  %v2049_v49 = vsel %vm2028_vm0, %v1932_v4, -inf }
 0x250   :  { %v1966_v21 = vsel %vm329_vm8, %v1959_v17, -inf  ;;  %v1982_v26 = vsel %vm1934_vm10, %v1957_v16, -inf  ;;  %v2006_v35 = vsel %vm1934_vm10, %v1959_v17, -inf  ;;  %v2020_v41 = vsel %vm1994_vm13, %v1957_v16, -inf }
 0x251   :  { %v1968_v22 = vpop.f32.mrf.mxu0  ;;  %v1970_v23 = vpop.f32.mrf.mxu1  ;;  %v357_v24 = vsel %vm341_vm9, %v1966_v21, -inf  ;;  %v454_v32 = vsel %vm341_vm9, %v1982_v26, -inf  ;;  %v466_v39 = vsel %vm341_vm9, %v2006_v35, -inf  ;;  %v563_v43 = vsel %vm341_vm9, %v2020_v41, -inf }
 0x252   :  { %452 = vmax.xlane.f32.xlu0 %v451_v20  ;;  %358 = vmax.xlane.f32.xlu1 %v357_v24  ;;  %v2040_v46 = vsel %vm1994_vm13, %v1959_v17, -inf  ;;  %v669_v47 = vsel %vm341_vm9, %v2035_v45, -inf  ;;  %v2054_v50 = vsel %vm2028_vm0, %v1957_v16, -inf  ;;  %v681_v51 = vsel %vm341_vm9, %v2049_v49, -inf }
 0x253   :  { %v301_v27 = vpop.f32.mrf.mxu0  ;;  %v321_v28 = vpop.f32.mrf.mxu1  ;;  %v575_v48 = vsel %vm341_vm9, %v2040_v46, -inf  ;;  %v672_v52 = vsel %vm341_vm9, %v2054_v50, -inf  ;;  %v2069_v54 = vsel %vm2062_vm3, %v1930_v3, -inf  ;;  %v2074_v55 = vsel %vm2028_vm0, %v1959_v17, -inf }
 0x254   :  { %v778_v56 = vsel %vm341_vm9, %v2069_v54, -inf  ;;  %v684_v57 = vsel %vm341_vm9, %v2074_v55, -inf  ;;  %v2083_v58 = vsel %vm2062_vm3, %v1932_v4, -inf  ;;  %v2088_v59 = vsel %vm2062_vm3, %v1957_v16, -inf }
 0x255   :  { %v1986_v29 = vpop.f32.mrf.mxu0  ;;  %v1988_v30 = vpop.f32.mrf.mxu1  ;;  %v790_v60 = vsel %vm341_vm9, %v2083_v58, -inf  ;;  %v781_v0 = vsel %vm341_vm9, %v2088_v59, -inf  ;;  %v2103_v2 = vsel %vm2096_vm6, %v1930_v3, -inf  ;;  %v2108_v5 = vsel %vm2062_vm3, %v1959_v17, -inf }
 0x256   :  { %464 = vmax.xlane.f32.xlu0 %v463_v31  ;;  %455 = vmax.xlane.f32.xlu1 %v454_v32  ;;  %v887_v6 = vsel %vm341_vm9, %v2103_v2, -inf  ;;  %v793_v8 = vsel %vm341_vm9, %v2108_v5, -inf  ;;  %v2117_v12 = vsel %vm2096_vm6, %v1932_v4, -inf  ;;  %v2122_v13 = vsel %vm2096_vm6, %v1957_v16, -inf }
 0x257   :  { %v306_v36 = vpop.f32.mrf.mxu0  ;;  %v326_v37 = vpop.f32.mrf.mxu1  ;;  %v899_v14 = vsel %vm341_vm9, %v2117_v12, -inf  ;;  %v890_v15 = vsel %vm341_vm9, %v2122_v13, -inf  ;;  %v3330_v18 = vmov 0  ;;  %v2137_v19 = vsel %vm2130_vm12, %v1930_v3, -inf }
 0x258   :  { %v3331_v18 = vsel %vm2130_vm12, 4294967295, %v3330_v18  ;;  %v2142_v20 = vsel %vm2096_vm6, %v1959_v17, -inf  ;;  %v996_v24 = vsel %vm341_vm9, %v2137_v19, -inf  ;;  %v2151_v28 = vsel %vm2130_vm12, %v1932_v4, -inf }
 0x259   :  { %3332 = vst [vmem:[#allocation12_spill] sm:$0xff] %v3331_v18  ;;  %v902_v27 = vsel %vm341_vm9, %v2142_v20, -inf  ;;  %v2156_v31 = vsel %vm2130_vm12, %v1957_v16, -inf  ;;  %v1008_v32 = vsel %vm341_vm9, %v2151_v28, -inf  ;;  %v3333_v37 = vmov 0 }
 0x25a   :  { %561 = vmax.xlane.f32.xlu0 %v560_v38  ;;  %467 = vmax.xlane.f32.xlu1 %v466_v39  ;;  %v999_v36 = vsel %vm341_vm9, %v2156_v31, -inf  ;;  %v3334_v37 = vsel %vm2164_vm1, 4294967295, %v3333_v37  ;;  %v2171_v38 = vsel %vm2164_vm1, %v1930_v3, -inf  ;;  %v2176_v39 = vsel %vm2130_vm12, %v1959_v17, -inf }
 0x25b   :  { %3335 = vst [vmem:[#allocation13_spill] sm:$0xff] %v3334_v37 }
 0x25e   :  { %573 = vmax.xlane.f32.xlu0 %v572_v42  ;;  %564 = vmax.xlane.f32.xlu1 %v563_v43  ;;  %v1105_v42 = vsel %vm341_vm9, %v2171_v38, -inf  ;;  %v1011_v43 = vsel %vm341_vm9, %v2176_v39, -inf }
 0x262   :  { %670 = vmax.xlane.f32.xlu0 %v669_v47  ;;  %576 = vmax.xlane.f32.xlu1 %v575_v48  ;;  %v2185_v47 = vsel %vm2164_vm1, %v1932_v4, -inf  ;;  %v2190_v48 = vsel %vm2164_vm1, %v1957_v16, -inf }
 0x266   :  { %682 = vmax.xlane.f32.xlu0 %v681_v51  ;;  %673 = vmax.xlane.f32.xlu1 %v672_v52  ;;  %v1117_v51 = vsel %vm341_vm9, %v2185_v47, -inf  ;;  %v1108_v52 = vsel %vm341_vm9, %v2190_v48, -inf }
 0x26a   :  { %779 = vmax.xlane.f32.xlu0 %v778_v56  ;;  %685 = vmax.xlane.f32.xlu1 %v684_v57  ;;  %v3336_v56 = vmov 0  ;;  %v2205_v57 = vsel %vm2198_vm5, %v1930_v3, -inf  ;;  %v2224_v3 = vsel %vm2198_vm5, %v1957_v16, -inf }
 0x26b   :  { %v3337_v56 = vsel %vm2198_vm5, 4294967295, %v3336_v56 }
 0x26c   :  { %3338 = vst [vmem:[#allocation14_spill] sm:$0xff] %v3337_v56 }
 0x26e   :  { %791 = vmax.xlane.f32.xlu0 %v790_v60  ;;  %782 = vmax.xlane.f32.xlu1 %v781_v0  ;;  %v2210_v60 = vsel %vm2164_vm1, %v1959_v17, -inf  ;;  %v1214_v0 = vsel %vm341_vm9, %v2205_v57, -inf }
 0x272   :  { %888 = vmax.xlane.f32.xlu0 %v887_v6  ;;  %794 = vmax.xlane.f32.xlu1 %v793_v8  ;;  %v1120_v6 = vsel %vm341_vm9, %v2210_v60, -inf  ;;  %v2219_v8 = vsel %vm2198_vm5, %v1932_v4, -inf  ;;  %v2241_v4 = vsel %vm329_vm8, %v1957_v16, -inf }
 0x276   :  { %900 = vmax.xlane.f32.xlu0 %v899_v14  ;;  %891 = vmax.xlane.f32.xlu1 %v890_v15  ;;  %v1226_v14 = vsel %vm341_vm9, %v2219_v8, -inf  ;;  %v1217_v15 = vsel %vm341_vm9, %v2224_v3, -inf }
 0x27a   :  { %997 = vmax.xlane.f32.xlu0 %v996_v24  ;;  %903 = vmax.xlane.f32.xlu1 %v902_v27  ;;  %v2232_v24 = vadd.f32 %v1968_v22, %v1921_v61  ;;  %v2236_v27 = vadd.f32 %v1986_v29, %v1925_v63  ;;  %v345_v61 = vsel %vm341_vm9, %v2241_v4, -inf }
 0x27c   :  { %v2261_v16 = vsel %vm329_vm8, %v2232_v24, -inf }
 0x27e   :  { %1009 = vmax.xlane.f32.xlu0 %v1008_v32  ;;  %1000 = vmax.xlane.f32.xlu1 %v999_v36  ;;  %v2246_v32 = vsel %vm2198_vm5, %v1959_v17, -inf  ;;  %v191_v36 = vpop.permute.xlu1 %190  ;;  %v2266_v17 = vsel %vm329_vm8, %v2236_v27, -inf }
 0x27f   :  { %3339 = vst [vmem:[#allocation15_spill] sm:$0xff] %v2246_v32  ;;  %v1229_v63 = vsel %vm341_vm9, %v2246_v32, -inf  ;;  %v2253_v22 = vadd.f32 %v1970_v23, %v191_v36  ;;  %3340 = vst [vmem:[#allocation16_spill] sm:$0xff] %v2266_v17  ;;  %v351_v23 = vsel %vm341_vm9, %v2266_v17, -inf }
 0x282   :  { %1106 = vmax.xlane.f32.xlu0 %v1105_v42  ;;  %1012 = vmax.xlane.f32.xlu1 %v1011_v43  ;;  %v196_v42 = vpop.permute.xlu0 %195  ;;  %v348_v43 = vsel %vm341_vm9, %v2261_v16, -inf }
 0x283   :  { %v2256_v29 = vadd.f32 %v1988_v30, %v196_v42  ;;  %v2275_v30 = vsel %vm329_vm8, %v2253_v22, -inf  ;;  %v2303_v42 = vsel %vm1934_vm10, %v2253_v22, -inf }
 0x286   :  { %1118 = vmax.xlane.f32.xlu0 %v1117_v51  ;;  %1109 = vmax.xlane.f32.xlu1 %v1108_v52  ;;  %v2280_v51 = vsel %vm329_vm8, %v2256_v29, -inf  ;;  %v360_v52 = vsel %vm341_vm9, %v2275_v30, -inf }
 0x287   :  { %3341 = vst [vmem:[#allocation17_spill] sm:$0xff] %v2280_v51 }
 0x28a   :  { %1215 = vmax.xlane.f32.xlu0 %v1214_v0  ;;  %1121 = vmax.xlane.f32.xlu1 %v1120_v6  ;;  %v363_v0 = vsel %vm341_vm9, %v2280_v51, -inf  ;;  %v2289_v6 = vsel %vm1934_vm10, %v2232_v24, -inf }
 0x28e   :  { %1227 = vmax.xlane.f32.xlu0 %v1226_v14  ;;  %1218 = vmax.xlane.f32.xlu1 %v1217_v15  ;;  %v2294_v14 = vsel %vm1934_vm10, %v2236_v27, -inf  ;;  %v457_v15 = vsel %vm341_vm9, %v2289_v6, -inf }
 0x28f   :  { %3342 = vst [vmem:[#allocation18_spill] sm:$0xff] %v2294_v14  ;;  %v460_v36 = vsel %vm341_vm9, %v2294_v14, -inf }
 0x292   :  { %346 = vmax.xlane.f32.xlu0 %v345_v61  ;;  %1230 = vmax.xlane.f32.xlu1 %v1229_v63  ;;  %v2308_v61 = vsel %vm1934_vm10, %v2256_v29, -inf  ;;  %v469_v63 = vsel %vm341_vm9, %v2303_v42, -inf }
 0x293   :  { %3343 = vst [vmem:[#allocation19_spill] sm:$0xff] %v2308_v61 }
 0x296   :  { %349 = vmax.xlane.f32.xlu0 %v348_v43  ;;  %352 = vmax.xlane.f32.xlu1 %v351_v23  ;;  %v472_v43 = vsel %vm341_vm9, %v2308_v61, -inf  ;;  %v2317_v23 = vsel %vm1994_vm13, %v2232_v24, -inf }
 0x29a   :  { %361 = vmax.xlane.f32.xlu0 %v360_v52  ;;  %364 = vmax.xlane.f32.xlu1 %v363_v0  ;;  %v2322_v52 = vsel %vm1994_vm13, %v2236_v27, -inf  ;;  %v566_v0 = vsel %vm341_vm9, %v2317_v23, -inf }
 0x29b   :  { %3344 = vst [vmem:[#allocation20_spill] sm:$0xff] %v2322_v52 }
 0x29e   :  { %458 = vmax.xlane.f32.xlu0 %v457_v15  ;;  %461 = vmax.xlane.f32.xlu1 %v460_v36  ;;  %v569_v15 = vsel %vm341_vm9, %v2322_v52, -inf  ;;  %v2331_v36 = vsel %vm1994_vm13, %v2253_v22, -inf }
 0x2a2   :  { %470 = vmax.xlane.f32.xlu0 %v469_v63  ;;  %473 = vmax.xlane.f32.xlu1 %v472_v43  ;;  %v2336_v63 = vsel %vm1994_vm13, %v2256_v29, -inf  ;;  %v578_v43 = vsel %vm341_vm9, %v2331_v36, -inf }
 0x2a3   :  { %3345 = vst [vmem:[#allocation21_spill] sm:$0xff] %v2336_v63  ;;  %v581_v7 = vsel %vm341_vm9, %v2336_v63, -inf }
 0x2a6   :  { %567 = vmax.xlane.f32.xlu0 %v566_v0  ;;  %570 = vmax.xlane.f32.xlu1 %v569_v15  ;;  %v2345_v0 = vsel %vm2028_vm0, %v2232_v24, -inf  ;;  %v2350_v15 = vsel %vm2028_vm0, %v2236_v27, -inf }
 0x2a7   :  { %3346 = vst [vmem:[#allocation22_spill] sm:$0xff] %v2350_v15  ;;  %v675_v33 = vsel %vm341_vm9, %v2345_v0, -inf  ;;  %v678_v62 = vsel %vm341_vm9, %v2350_v15, -inf }
 0x2aa   :  { %579 = vmax.xlane.f32.xlu0 %v578_v43  ;;  %582 = vmax.xlane.f32.xlu1 %v581_v7  ;;  %v2359_v7 = vsel %vm2028_vm0, %v2253_v22, -inf  ;;  %v2364_v43 = vsel %vm2028_vm0, %v2256_v29, -inf }
 0x2ab   :  { %3347 = vst [vmem:[#allocation23_spill] sm:$0xff] %v2364_v43  ;;  %v687_v63 = vsel %vm341_vm9, %v2359_v7, -inf  ;;  %v690_v52 = vsel %vm341_vm9, %v2364_v43, -inf }
 0x2ae   :  { %676 = vmax.xlane.f32.xlu0 %v675_v33  ;;  %679 = vmax.xlane.f32.xlu1 %v678_v62  ;;  %v2373_v62 = vsel %vm2062_vm3, %v2232_v24, -inf  ;;  %v2378_v33 = vsel %vm2062_vm3, %v2236_v27, -inf }
 0x2af   :  { %3348 = vst [vmem:[#allocation24_spill] sm:$0xff] %v2378_v33  ;;  %v784_v44 = vsel %vm341_vm9, %v2373_v62, -inf  ;;  %v787_v15 = vsel %vm341_vm9, %v2378_v33, -inf }
 0x2b2   :  { %688 = vmax.xlane.f32.xlu0 %v687_v63  ;;  %691 = vmax.xlane.f32.xlu1 %v690_v52  ;;  %v2387_v52 = vsel %vm2062_vm3, %v2253_v22, -inf  ;;  %v2392_v63 = vsel %vm2062_vm3, %v2256_v29, -inf }
 0x2b3   :  { %3349 = vst [vmem:[#allocation25_spill] sm:$0xff] %v2392_v63  ;;  %v796_v43 = vsel %vm341_vm9, %v2387_v52, -inf  ;;  %v799_v61 = vsel %vm341_vm9, %v2392_v63, -inf }
 0x2b6   :  { %785 = vmax.xlane.f32.xlu0 %v784_v44  ;;  %788 = vmax.xlane.f32.xlu1 %v787_v15  ;;  %v2401_v44 = vsel %vm2096_vm6, %v2232_v24, -inf  ;;  %v2406_v15 = vsel %vm2096_vm6, %v2236_v27, -inf }
 0x2b7   :  { %3350 = vst [vmem:[#allocation26_spill] sm:$0xff] %v2406_v15  ;;  %v893_v53 = vsel %vm341_vm9, %v2401_v44, -inf  ;;  %v896_v33 = vsel %vm341_vm9, %v2406_v15, -inf }
 0x2ba   :  { %797 = vmax.xlane.f32.xlu0 %v796_v43  ;;  %800 = vmax.xlane.f32.xlu1 %v799_v61  ;;  %v2415_v61 = vsel %vm2096_vm6, %v2253_v22, -inf  ;;  %v2420_v43 = vsel %vm2096_vm6, %v2256_v29, -inf }
 0x2bb   :  { %3351 = vst [vmem:[#allocation27_spill] sm:$0xff] %v2420_v43  ;;  %v905_v63 = vsel %vm341_vm9, %v2415_v61, -inf  ;;  %v908_v14 = vsel %vm341_vm9, %v2420_v43, -inf }
 0x2be   :  { %894 = vmax.xlane.f32.xlu0 %v893_v53  ;;  %897 = vmax.xlane.f32.xlu1 %v896_v33  ;;  %v2429_v53 = vsel %vm2130_vm12, %v2232_v24, -inf  ;;  %v2434_v33 = vsel %vm2130_vm12, %v2236_v27, -inf }
 0x2bf   :  { %3352 = vst [vmem:[#allocation28_spill] sm:$0xff] %v2434_v33  ;;  %v1002_v1 = vsel %vm341_vm9, %v2429_v53, -inf  ;;  %v1005_v15 = vsel %vm341_vm9, %v2434_v33, -inf }
 0x2c2   :  { %906 = vmax.xlane.f32.xlu0 %v905_v63  ;;  %909 = vmax.xlane.f32.xlu1 %v908_v14  ;;  %v2443_v14 = vsel %vm2130_vm12, %v2253_v22, -inf  ;;  %v2448_v63 = vsel %vm2130_vm12, %v2256_v29, -inf }
 0x2c3   :  { %3353 = vst [vmem:[#allocation29_spill] sm:$0xff] %v2448_v63  ;;  %v1014_v43 = vsel %vm341_vm9, %v2443_v14, -inf  ;;  %v1017_v51 = vsel %vm341_vm9, %v2448_v63, -inf }
 0x2c6   :  { %1003 = vmax.xlane.f32.xlu0 %v1002_v1  ;;  %1006 = vmax.xlane.f32.xlu1 %v1005_v15  ;;  %v2457_v1 = vsel %vm2164_vm1, %v2232_v24, -inf  ;;  %v2462_v15 = vsel %vm2164_vm1, %v2236_v27, -inf }
 0x2c7   :  { %3354 = vst [vmem:[#allocation30_spill] sm:$0xff] %v2462_v15  ;;  %v1111_v18 = vsel %vm341_vm9, %v2457_v1, -inf  ;;  %v1114_v33 = vsel %vm341_vm9, %v2462_v15, -inf }
 0x2ca   :  { %1015 = vmax.xlane.f32.xlu0 %v1014_v43  ;;  %1018 = vmax.xlane.f32.xlu1 %v1017_v51  ;;  %v2471_v51 = vsel %vm2164_vm1, %v2253_v22, -inf  ;;  %v2476_v43 = vsel %vm2164_vm1, %v2256_v29, -inf }
 0x2cb   :  { %3355 = vst [vmem:[#allocation31_spill] sm:$0xff] %v2471_v51  ;;  %3356 = vst [vmem:[#allocation32_spill] sm:$0xff] %v2476_v43  ;;  %v1123_v63 = vsel %vm341_vm9, %v2471_v51, -inf  ;;  %v1126_v17 = vsel %vm341_vm9, %v2476_v43, -inf }
 0x2ce   :  { %1112 = vmax.xlane.f32.xlu0 %v1111_v18  ;;  %1115 = vmax.xlane.f32.xlu1 %v1114_v33  ;;  %v2485_v18 = vsel %vm2198_vm5, %v2232_v24, -inf  ;;  %v2490_v33 = vsel %vm2198_vm5, %v2236_v27, -inf  ;;  %v2504_v24 = vsel %vm2198_vm5, %v2256_v29, -inf }
 0x2cf   :  { %3357 = vst [vmem:[#allocation33_spill] sm:$0xff] %v2485_v18  ;;  %3358 = vst [vmem:[#allocation34_spill] sm:$0xff] %v2490_v33  ;;  %v1220_v37 = vsel %vm341_vm9, %v2485_v18, -inf  ;;  %v1223_v15 = vsel %vm341_vm9, %v2490_v33, -inf }
 0x2d0   :  { %3360 = vst [vmem:[#allocation36_spill] sm:$0xff] %v2504_v24 }
 0x2d2   :  { %1124 = vmax.xlane.f32.xlu0 %v1123_v63  ;;  %1127 = vmax.xlane.f32.xlu1 %v1126_v17  ;;  %v2499_v17 = vsel %vm2198_vm5, %v2253_v22, -inf }
 0x2d3   :  { %3359 = vst [vmem:[#allocation35_spill] sm:$0xff] %v2499_v17 }
 0x2d6   :  { %1221 = vmax.xlane.f32.xlu0 %v1220_v37  ;;  %1224 = vmax.xlane.f32.xlu1 %v1223_v15  ;;  %v1232_v37 = vsel %vm341_vm9, %v2499_v17, -inf  ;;  %v1235_v15 = vsel %vm341_vm9, %v2504_v24, -inf }
 0x2d7   :  { %v356_v27 = vpop.xlane.xlu0 %355  ;;  %v344_v63 = vpop.xlane.xlu1 %343 }
 0x2d8   :  { %v370_v43 = vsub.f32 %v1941_v9, %v356_v27  ;;  %v366_v18 = vsub.f32 %v1946_v10, %v344_v63 }
 0x2da   :  { %v374_v33 = vmul.f32 1.442695, %v366_v18  ;;  %1233 = vmax.xlane.f32.xlu0 %v1232_v37  ;;  %1236 = vmax.xlane.f32.xlu1 %v1235_v15  ;;  %v382_v22 = vmul.f32 1.442695, %v370_v43 }
 0x2db   :  { %v453_v51 = vpop.xlane.xlu0 %452  ;;  %v2512_v56 = vpop.xlane.xlu1 %358 }
 0x2dc   :  { %v475_v29 = vsub.f32 %v1951_v11, %v453_v51  ;;  %1410 = vpow2.f32 %v374_v33 }
 0x2dd   :  { %1412 = vpow2.f32 %v382_v22 }
 0x2de   :  { %v483_v9 = vmul.f32 1.442695, %v475_v29 }
 0x2df   :  { %v465_v27 = vpop.xlane.xlu0 %464  ;;  %v2515_v10 = vpop.xlane.xlu1 %455 }
 0x2e0   :  { %v479_v63 = vsub.f32 %v1977_v25, %v465_v27  ;;  %1414 = vpow2.f32 %v483_v9 }
 0x2e2   :  { %v491_v17 = vmul.f32 1.442695, %v479_v63 }
 0x2e3   :  { %v562_v24 = vpop.xlane.xlu0 %561  ;;  %v2518_v18 = vpop.xlane.xlu1 %467 }
 0x2e4   :  { %v584_v43 = vsub.f32 %v2001_v34, %v562_v24  ;;  %1416 = vpow2.f32 %v491_v17 }
 0x2e6   :  { %v592_v37 = vmul.f32 1.442695, %v584_v43 }
 0x2e7   :  { %v574_v15 = vpop.xlane.xlu0 %573  ;;  %v2521_v32 = vpop.xlane.xlu1 %564 }
 0x2e8   :  { %v588_v11 = vsub.f32 %v2015_v40, %v574_v15  ;;  %1418 = vpow2.f32 %v592_v37 }
 0x2e9   :  { %v2524_v51 = vpop.eup %1410 }
 0x2ea   :  { %v600_v33 = vmul.f32 1.442695, %v588_v11  ;;  %v390_v25 = vsel %vm341_vm9, %v2524_v51, 0.0  ;;  %v2530_v9 = vpop.eup %1412 }
 0x2eb   :  { %v671_v22 = vpop.xlane.xlu0 %670  ;;  %v2528_v29 = vpop.xlane.xlu1 %576  ;;  %3361 = vst [vmem:[#allocation37_spill] sm:$0xff] %v2530_v9  ;;  %391 = vadd.xlane.f32.xlu0 %v390_v25  ;;  %v402_v40 = vsel %vm341_vm9, %v2530_v9, 0.0 }
 0x2ec   :  { %v693_v34 = vsub.f32 %v2035_v45, %v671_v22  ;;  %1420 = vpow2.f32 %v600_v33 }
 0x2ed   :  { %v2537_v63 = vpop.eup %1414 }
 0x2ee   :  { %v701_v17 = vmul.f32 1.442695, %v693_v34  ;;  %v499_v45 = vsel %vm341_vm9, %v2537_v63, 0.0 }
 0x2ef   :  { %v683_v24 = vpop.xlane.xlu0 %682  ;;  %v2535_v27 = vpop.xlane.xlu1 %673  ;;  %403 = vadd.xlane.f32.xlu0 %v402_v40 }
 0x2f0   :  { %v697_v43 = vsub.f32 %v2049_v49, %v683_v24  ;;  %1422 = vpow2.f32 %v701_v17 }
 0x2f1   :  { %v2544_v33 = vpop.eup %1416 }
 0x2f2   :  { %v709_v37 = vmul.f32 1.442695, %v697_v43  ;;  %3362 = vst [vmem:[#allocation38_spill] sm:$0xff] %v2544_v33  ;;  %v511_v49 = vsel %vm341_vm9, %v2544_v33, 0.0 }
 0x2f3   :  { %v780_v15 = vpop.xlane.xlu0 %779  ;;  %v2542_v11 = vpop.xlane.xlu1 %685  ;;  %500 = vadd.xlane.f32.xlu0 %v499_v45 }
 0x2f4   :  { %v802_v22 = vsub.f32 %v2069_v54, %v780_v15  ;;  %1424 = vpow2.f32 %v709_v37 }
 0x2f5   :  { %v2549_v24 = vpop.eup %1418 }
 0x2f6   :  { %v810_v25 = vmul.f32 1.442695, %v802_v22  ;;  %v608_v54 = vsel %vm341_vm9, %v2549_v24, 0.0 }
 0x2f7   :  { %v792_v34 = vpop.xlane.xlu0 %791  ;;  %512 = vadd.xlane.f32.xlu0 %v511_v49  ;;  %v2552_v40 = vpop.xlane.xlu1 %782 }
 0x2f8   :  { %v806_v17 = vsub.f32 %v2083_v58, %v792_v34  ;;  %1426 = vpow2.f32 %v810_v25 }
 0x2f9   :  { %v2556_v15 = vpop.eup %1420 }
 0x2fa   :  { %v818_v43 = vmul.f32 1.442695, %v806_v17  ;;  %3363 = vst [vmem:[#allocation39_spill] sm:$0xff] %v2556_v15  ;;  %v620_v58 = vsel %vm341_vm9, %v2556_v15, 0.0 }
 0x2fb   :  { %v889_v9 = vpop.xlane.xlu0 %888  ;;  %609 = vadd.xlane.f32.xlu0 %v608_v54  ;;  %v2559_v45 = vpop.xlane.xlu1 %794 }
 0x2fc   :  { %v911_v37 = vsub.f32 %v2103_v2, %v889_v9  ;;  %1428 = vpow2.f32 %v818_v43 }
 0x2fd   :  { %v2563_v34 = vpop.eup %1422 }
 0x2fe   :  { %v919_v22 = vmul.f32 1.442695, %v911_v37  ;;  %3364 = vst [vmem:[#allocation40_spill] sm:$0xff] %v2563_v34  ;;  %v717_v2 = vsel %vm341_vm9, %v2563_v34, 0.0 }
 0x2ff   :  { %v901_v33 = vpop.xlane.xlu0 %900  ;;  %621 = vadd.xlane.f32.xlu0 %v620_v58  ;;  %v2570_v54 = vpop.xlane.xlu1 %891 }
 0x300   :  { %v915_v25 = vsub.f32 %v2117_v12, %v901_v33  ;;  %1430 = vpow2.f32 %v919_v22 }
 0x301   :  { %v2568_v9 = vpop.eup %1424 }
 0x302   :  { %v927_v49 = vmul.f32 1.442695, %v915_v25  ;;  %3365 = vst [vmem:[#allocation41_spill] sm:$0xff] %v2568_v9  ;;  %v729_v12 = vsel %vm341_vm9, %v2568_v9, 0.0 }
 0x303   :  { %v998_v17 = vpop.xlane.xlu0 %997  ;;  %718 = vadd.xlane.f32.xlu0 %v717_v2  ;;  %v2578_v58 = vpop.xlane.xlu1 %903 }
 0x304   :  { %v1020_v43 = vsub.f32 %v2137_v19, %v998_v17  ;;  %1432 = vpow2.f32 %v927_v49 }
 0x305   :  { %v2575_v33 = vpop.eup %1426 }
 0x306   :  { %v1028_v37 = vmul.f32 1.442695, %v1020_v43  ;;  %v826_v19 = vsel %vm341_vm9, %v2575_v33, 0.0 }
 0x307   :  { %v1010_v15 = vpop.xlane.xlu0 %1009  ;;  %730 = vadd.xlane.f32.xlu0 %v729_v12  ;;  %v2589_v12 = vpop.xlane.xlu1 %1000 }
 0x308   :  { %v1024_v22 = vsub.f32 %v2151_v28, %v1010_v15  ;;  %1434 = vpow2.f32 %v1028_v37 }
 0x309   :  { %v2582_v17 = vpop.eup %1428 }
 0x30a   :  { %v1036_v25 = vmul.f32 1.442695, %v1024_v22  ;;  %3366 = vst [vmem:[#allocation42_spill] sm:$0xff] %v2582_v17  ;;  %v838_v28 = vsel %vm341_vm9, %v2582_v17, 0.0 }
 0x30b   :  { %v1107_v34 = vpop.xlane.xlu0 %1106  ;;  %827 = vadd.xlane.f32.xlu0 %v826_v19  ;;  %v2597_v19 = vpop.xlane.xlu1 %1012 }
 0x30c   :  { %v1129_v49 = vsub.f32 %v2171_v38, %v1107_v34  ;;  %1436 = vpow2.f32 %v1036_v25 }
 0x30d   :  { %v2587_v15 = vpop.eup %1430 }
 0x30e   :  { %v1137_v2 = vmul.f32 1.442695, %v1129_v49  ;;  %v935_v38 = vsel %vm341_vm9, %v2587_v15, 0.0 }
 0x30f   :  { %v1119_v43 = vpop.xlane.xlu0 %1118  ;;  %839 = vadd.xlane.f32.xlu0 %v838_v28  ;;  %v371_v28 = vsub.f32 %v1966_v21, %v2512_v56 }
 0x310   :  { %v1133_v37 = vsub.f32 %v2185_v47, %v1119_v43  ;;  %1438 = vpow2.f32 %v1137_v2 }
 0x311   :  { %v2594_v34 = vpop.eup %1432 }
 0x312   :  { %v1145_v22 = vmul.f32 1.442695, %v1133_v37  ;;  %3367 = vst [vmem:[#allocation43_spill] sm:$0xff] %v2594_v34  ;;  %v947_v47 = vsel %vm341_vm9, %v2594_v34, 0.0  ;;  %v384_v34 = vmul.f32 1.442695, %v371_v28 }
 0x313   :  { %v1216_v9 = vpop.xlane.xlu0 %1215  ;;  %936 = vadd.xlane.f32.xlu0 %v935_v38  ;;  %v2610_v38 = vpop.xlane.xlu1 %1109 }
 0x314   :  { %v1238_v25 = vsub.f32 %v2205_v57, %v1216_v9  ;;  %1440 = vpow2.f32 %v1145_v22 }
 0x315   :  { %v2601_v43 = vpop.eup %1434 }
 0x316   :  { %v1246_v49 = vmul.f32 1.442695, %v1238_v25  ;;  %v1044_v9 = vsel %vm341_vm9, %v2601_v43, 0.0 }
 0x317   :  { %v1228_v17 = vpop.xlane.xlu0 %1227  ;;  %948 = vadd.xlane.f32.xlu0 %v947_v47  ;;  %v2622_v28 = vpop.xlane.xlu1 %1121 }
 0x318   :  { %v1242_v2 = vsub.f32 %v2219_v8, %v1228_v17  ;;  %1442 = vpow2.f32 %v1246_v49  ;;  %v476_v8 = vsub.f32 %v1982_v26, %v2515_v10 }
 0x319   :  { %v2608_v22 = vpop.eup %1436 }
 0x31a   :  { %v1254_v37 = vmul.f32 1.442695, %v1242_v2  ;;  %v1056_v56 = vsel %vm341_vm9, %v2608_v22, 0.0  ;;  %v485_v2 = vmul.f32 1.442695, %v476_v8 }
 0x31b   :  { %v347_v57 = vpop.xlane.xlu0 %346  ;;  %1045 = vadd.xlane.f32.xlu0 %v1044_v9 }
 0x31c   :  { %v367_v25 = vsub.f32 %v2241_v4, %v347_v57  ;;  %1444 = vpow2.f32 %v1254_v37  ;;  %v480_v4 = vsub.f32 %v2006_v35, %v2518_v18 }
 0x31d   :  { %v2617_v49 = vpop.eup %1438 }
 0x31e   :  { %v376_v17 = vmul.f32 1.442695, %v367_v25  ;;  %v1153_v37 = vsel %vm341_vm9, %v2617_v49, 0.0 }
 0x31f   :  { %v350_v21 = vpop.xlane.xlu0 %349  ;;  %1057 = vadd.xlane.f32.xlu0 %v1056_v56  ;;  %v589_v56 = vsub.f32 %v2040_v46, %v2528_v29 }
 0x320   :  { %1446 = vpow2.f32 %v376_v17  ;;  %v368_v47 = vsub.f32 %v2261_v16, %v350_v21  ;;  %v585_v16 = vsub.f32 %v2020_v41, %v2521_v32  ;;  %v2635_v17 = vpop.xlane.xlu1 %1218 }
 0x321   :  { %1448 = vpow2.f32 %v384_v34  ;;  %v2626_v57 = vpop.eup %1440  ;;  %v493_v34 = vmul.f32 1.442695, %v480_v4 }
 0x322   :  { %v378_v26 = vmul.f32 1.442695, %v368_v47  ;;  %v1165_v18 = vsel %vm341_vm9, %v2626_v57, 0.0 }
 0x323   :  { %v362_v10 = vpop.xlane.xlu0 %361  ;;  %1154 = vadd.xlane.f32.xlu0 %v1153_v37 }
 0x324   :  { %1450 = vpow2.f32 %v378_v26  ;;  %v372_v9 = vsub.f32 %v2275_v30, %v362_v10  ;;  %v594_v30 = vmul.f32 1.442695, %v585_v16  ;;  %v694_v10 = vsub.f32 %v2054_v50, %v2535_v27  ;;  %v2649_v46 = vpop.xlane.xlu1 %1230 }
 0x325   :  { %1452 = vpow2.f32 %v485_v2  ;;  %v2633_v8 = vpop.eup %1442  ;;  %v698_v27 = vsub.f32 %v2074_v55, %v2542_v11  ;;  %v803_v11 = vsub.f32 %v2088_v59, %v2552_v40  ;;  %v807_v40 = vsub.f32 %v2108_v5, %v2559_v45 }
 0x326   :  { %v386_v25 = vmul.f32 1.442695, %v372_v9  ;;  %v1262_v47 = vsel %vm341_vm9, %v2633_v8, 0.0  ;;  %v703_v50 = vmul.f32 1.442695, %v694_v10 }
 0x327   :  { %v459_v35 = vpop.xlane.xlu0 %458  ;;  %1166 = vadd.xlane.f32.xlu0 %v1165_v18  ;;  %v711_v55 = vmul.f32 1.442695, %v698_v27 }
 0x328   :  { %1454 = vpow2.f32 %v386_v25  ;;  %v477_v21 = vsub.f32 %v2289_v6, %v459_v35  ;;  %v602_v6 = vmul.f32 1.442695, %v589_v56 }
 0x329   :  { %1456 = vpow2.f32 %v493_v34  ;;  %v2642_v2 = vpop.eup %1444 }
 0x32a   :  { %v487_v41 = vmul.f32 1.442695, %v477_v21 }
 0x32b   :  { %v471_v32 = vpop.xlane.xlu0 %470  ;;  %1263 = vadd.xlane.f32.xlu0 %v1262_v47 }
 0x32c   :  { %1458 = vpow2.f32 %v487_v41  ;;  %v481_v4 = vsub.f32 %v2303_v42, %v471_v32  ;;  %v1274_v42 = vsel %vm341_vm9, %v2642_v2, 0.0 }
 0x32d   :  { %v2645_v26 = vpop.eup %1446  ;;  %1460 = vpow2.f32 %v594_v30 }
 0x32e   :  { %v495_v29 = vmul.f32 1.442695, %v481_v4  ;;  %v393_v37 = vsel %vm341_vm9, %v2645_v26, 0.0  ;;  %v2653_v9 = vpop.eup %1448 }
 0x32f   :  { %v568_v16 = vpop.xlane.xlu0 %567  ;;  %394 = vadd.xlane.f32.xlu1 %v393_v37  ;;  %1275 = vadd.xlane.f32.xlu0 %v1274_v42  ;;  %v405_v21 = vsel %vm341_vm9, %v2653_v9, 0.0 }
 0x330   :  { %1462 = vpow2.f32 %v495_v29  ;;  %v586_v34 = vsub.f32 %v2317_v23, %v568_v16  ;;  %v2668_v23 = vpop.xlane.xlu1 %352  ;;  %v812_v16 = vmul.f32 1.442695, %v803_v11 }
 0x331   :  { %v2658_v25 = vpop.eup %1450  ;;  %1464 = vpow2.f32 %v602_v6 }
 0x332   :  { %v596_v35 = vmul.f32 1.442695, %v586_v34  ;;  %v396_v18 = vsel %vm341_vm9, %v2658_v25, 0.0  ;;  %v2666_v30 = vpop.eup %1452 }
 0x333   :  { %v580_v56 = vpop.xlane.xlu0 %579  ;;  %406 = vadd.xlane.f32.xlu1 %v405_v21  ;;  %397 = vadd.xlane.f32.xlu0 %v396_v18  ;;  %v502_v6 = vsel %vm341_vm9, %v2666_v30, 0.0  ;;  %v820_v21 = vmul.f32 1.442695, %v807_v40 }
 0x334   :  { %1466 = vpow2.f32 %v596_v35  ;;  %v590_v41 = vsub.f32 %v2331_v36, %v580_v56  ;;  %v2688_v42 = vpop.xlane.xlu1 %364  ;;  %v912_v56 = vsub.f32 %v2122_v13, %v2570_v54 }
 0x335   :  { %v2671_v32 = vpop.eup %1454  ;;  %1468 = vpow2.f32 %v703_v50 }
 0x336   :  { %v604_v47 = vmul.f32 1.442695, %v590_v41  ;;  %v408_v4 = vsel %vm341_vm9, %v2671_v32, 0.0  ;;  %v2679_v10 = vpop.eup %1456 }
 0x337   :  { %v677_v29 = vpop.xlane.xlu0 %676  ;;  %503 = vadd.xlane.f32.xlu1 %v502_v6  ;;  %409 = vadd.xlane.f32.xlu0 %v408_v4  ;;  %v514_v27 = vsel %vm341_vm9, %v2679_v10, 0.0  ;;  %v916_v6 = vsub.f32 %v2142_v20, %v2578_v58 }
 0x338   :  { %1470 = vpow2.f32 %v604_v47  ;;  %v695_v36 = vsub.f32 %v2345_v0, %v677_v29  ;;  %v921_v29 = vmul.f32 1.442695, %v912_v56 }
 0x339   :  { %v2682_v37 = vpop.eup %1458  ;;  %1472 = vpow2.f32 %v711_v55  ;;  %v929_v20 = vmul.f32 1.442695, %v916_v6 }
 0x33a   :  { %v2684_v59 = vpop.eup %1460  ;;  %v705_v34 = vmul.f32 1.442695, %v695_v36  ;;  %v505_v50 = vsel %vm341_vm9, %v2682_v37, 0.0 }
 0x33b   :  { %v689_v0 = vpop.xlane.xlu0 %688  ;;  %515 = vadd.xlane.f32.xlu1 %v514_v27  ;;  %506 = vadd.xlane.f32.xlu0 %v505_v50  ;;  %v611_v5 = vsel %vm341_vm9, %v2684_v59, 0.0  ;;  %v1021_v27 = vsub.f32 %v2156_v31, %v2589_v12  ;;  %v1025_v12 = vsub.f32 %v2176_v39, %v2597_v19 }
 0x33c   :  { %1474 = vpow2.f32 %v705_v34  ;;  %v699_v35 = vsub.f32 %v2359_v7, %v689_v0  ;;  %v2705_v7 = vpop.xlane.xlu1 %461 }
 0x33d   :  { %v2695_v18 = vpop.eup %1462  ;;  %1476 = vpow2.f32 %v812_v16  ;;  %v1030_v31 = vmul.f32 1.442695, %v1021_v27  ;;  %v1038_v19 = vmul.f32 1.442695, %v1025_v12 }
 0x33e   :  { %v2699_v45 = vpop.eup %1464  ;;  %v713_v41 = vmul.f32 1.442695, %v699_v35  ;;  %v517_v55 = vsel %vm341_vm9, %v2695_v18, 0.0 }
 0x33f   :  { %v786_v11 = vpop.xlane.xlu0 %785  ;;  %612 = vadd.xlane.f32.xlu1 %v611_v5  ;;  %518 = vadd.xlane.f32.xlu0 %v517_v55  ;;  %v623_v13 = vsel %vm341_vm9, %v2699_v45, 0.0 }
 0x340   :  { %1478 = vpow2.f32 %v713_v41  ;;  %v804_v47 = vsub.f32 %v2373_v62, %v786_v11  ;;  %v2727_v0 = vpop.xlane.xlu1 %473 }
 0x341   :  { %v2708_v4 = vpop.eup %1466  ;;  %1480 = vpow2.f32 %v820_v21 }
 0x342   :  { %v2714_v54 = vpop.eup %1468  ;;  %v814_v36 = vmul.f32 1.442695, %v804_v47  ;;  %v614_v16 = vsel %vm341_vm9, %v2708_v4, 0.0 }
 0x343   :  { %v798_v40 = vpop.xlane.xlu0 %797  ;;  %624 = vadd.xlane.f32.xlu1 %v623_v13  ;;  %615 = vadd.xlane.f32.xlu0 %v614_v16  ;;  %v720_v58 = vsel %vm341_vm9, %v2714_v54, 0.0 }
 0x344   :  { %1482 = vpow2.f32 %v814_v36  ;;  %v808_v62 = vsub.f32 %v2387_v52, %v798_v40  ;;  %v1130_v36 = vsub.f32 %v2190_v48, %v2610_v38  ;;  %v1134_v38 = vsub.f32 %v2210_v60, %v2622_v28 }
 0x345   :  { %v2719_v34 = vpop.eup %1470  ;;  %1484 = vpow2.f32 %v921_v29  ;;  %v1239_v28 = vsub.f32 %v2224_v3, %v2635_v17  ;;  %v3370_v17 = vld [vmem:[#allocation15_spill] sm:$0xff] }
 0x346   :  { %v2723_v50 = vpop.eup %1472  ;;  %v822_v35 = vmul.f32 1.442695, %v808_v62  ;;  %v626_v5 = vsel %vm341_vm9, %v2719_v34, 0.0  ;;  %v1139_v48 = vmul.f32 1.442695, %v1130_v36 }
 0x347   :  { %v895_v52 = vpop.xlane.xlu0 %894  ;;  %721 = vadd.xlane.f32.xlu1 %v720_v58  ;;  %627 = vadd.xlane.f32.xlu0 %v626_v5  ;;  %v732_v41 = vsel %vm341_vm9, %v2723_v50, 0.0  ;;  %v1147_v60 = vmul.f32 1.442695, %v1134_v38  ;;  %v1248_v3 = vmul.f32 1.442695, %v1239_v28 }
 0x348   :  { %1486 = vpow2.f32 %v822_v35  ;;  %v913_v21 = vsub.f32 %v2401_v44, %v895_v52  ;;  %v2742_v44 = vpop.xlane.xlu1 %570 }
 0x349   :  { %v2732_v56 = vpop.eup %1474  ;;  %1488 = vpow2.f32 %v929_v20 }
 0x34a   :  { %v2736_v55 = vpop.eup %1476  ;;  %v923_v11 = vmul.f32 1.442695, %v913_v21  ;;  %v723_v47 = vsel %vm341_vm9, %v2732_v56, 0.0 }
 0x34b   :  { %v907_v6 = vpop.xlane.xlu0 %906  ;;  %733 = vadd.xlane.f32.xlu1 %v732_v41  ;;  %724 = vadd.xlane.f32.xlu0 %v723_v47  ;;  %v829_v39 = vsel %vm341_vm9, %v2736_v55, 0.0 }
 0x34c   :  { %1490 = vpow2.f32 %v923_v11  ;;  %v917_v13 = vsub.f32 %v2415_v61, %v907_v6  ;;  %v2760_v27 = vpop.xlane.xlu1 %582 }
 0x34d   :  { %v2745_v29 = vpop.eup %1478  ;;  %1492 = vpow2.f32 %v1030_v31 }
 0x34e   :  { %3368 = vst [vmem:[#allocation44_spill] sm:$0xff] %v2745_v29  ;;  %v931_v16 = vmul.f32 1.442695, %v917_v13  ;;  %v735_v40 = vsel %vm341_vm9, %v2745_v29, 0.0  ;;  %v2753_v62 = vpop.eup %1480 }
 0x34f   :  { %v1004_v20 = vpop.xlane.xlu0 %1003  ;;  %830 = vadd.xlane.f32.xlu1 %v829_v39  ;;  %736 = vadd.xlane.f32.xlu0 %v735_v40  ;;  %v841_v52 = vsel %vm341_vm9, %v2753_v62, 0.0 }
 0x350   :  { %1494 = vpow2.f32 %v931_v16  ;;  %v1022_v61 = vsub.f32 %v2429_v53, %v1004_v20 }
 0x351   :  { %v2756_v58 = vpop.eup %1482  ;;  %1496 = vpow2.f32 %v1038_v19  ;;  %v1243_v19 = vsub.f32 %v3370_v17, %v2649_v46  ;;  %v3373_v46 = vld [vmem:[#allocation16_spill] sm:$0xff]  ;;  %v3377_v17 = vld [vmem:[#allocation17_spill] sm:$0xff] }
 0x352   :  { %v1032_v35 = vmul.f32 1.442695, %v1022_v61  ;;  %v832_v5 = vsel %vm341_vm9, %v2756_v58, 0.0  ;;  %v2766_v21 = vpop.eup %1484 }
 0x353   :  { %v1016_v53 = vpop.xlane.xlu0 %1015  ;;  %842 = vadd.xlane.f32.xlu1 %v841_v52  ;;  %833 = vadd.xlane.f32.xlu0 %v832_v5  ;;  %v938_v6 = vsel %vm341_vm9, %v2766_v21, 0.0  ;;  %v1256_v5 = vmul.f32 1.442695, %v1243_v19  ;;  %v369_v52 = vsub.f32 %v3373_v46, %v2668_v23  ;;  %v373_v19 = vsub.f32 %v3377_v17, %v2688_v42 }
 0x354   :  { %1498 = vpow2.f32 %v1032_v35  ;;  %v1026_v41 = vsub.f32 %v2443_v14, %v1016_v53  ;;  %v2779_v14 = vpop.xlane.xlu1 %679 }
 0x355   :  { %v2769_v31 = vpop.eup %1486  ;;  %1500 = vpow2.f32 %v1139_v48  ;;  %v380_v23 = vmul.f32 1.442695, %v369_v52 }
 0x356   :  { %3369 = vst [vmem:[#allocation45_spill] sm:$0xff] %v2769_v31  ;;  %v2773_v12 = vpop.eup %1488  ;;  %v1040_v11 = vmul.f32 1.442695, %v1026_v41  ;;  %v844_v47 = vsel %vm341_vm9, %v2769_v31, 0.0 }
 0x357   :  { %v1113_v13 = vpop.xlane.xlu0 %1112  ;;  %939 = vadd.xlane.f32.xlu1 %v938_v6  ;;  %845 = vadd.xlane.f32.xlu0 %v844_v47  ;;  %v950_v20 = vsel %vm341_vm9, %v2773_v12, 0.0  ;;  %v3375_v6 = vld [vmem:[#allocation33_spill] sm:$0xff] }
 0x358   :  { %1502 = vpow2.f32 %v1040_v11  ;;  %v1131_v36 = vsub.f32 %v2457_v1, %v1113_v13  ;;  %v3371_v1 = vld [vmem:[#allocation31_spill] sm:$0xff]  ;;  %v2797_v53 = vpop.xlane.xlu1 %691 }
 0x359   :  { %v2782_v39 = vpop.eup %1490  ;;  %1504 = vpow2.f32 %v1147_v60 }
 0x35a   :  { %v1141_v16 = vmul.f32 1.442695, %v1131_v36  ;;  %v941_v40 = vsel %vm341_vm9, %v2782_v39, 0.0  ;;  %v2790_v61 = vpop.eup %1492 }
 0x35b   :  { %v1125_v48 = vpop.xlane.xlu0 %1124  ;;  %951 = vadd.xlane.f32.xlu1 %v950_v20  ;;  %942 = vadd.xlane.f32.xlu0 %v941_v40  ;;  %v1047_v28 = vsel %vm341_vm9, %v2790_v61, 0.0 }
 0x35c   :  { %1506 = vpow2.f32 %v1141_v16  ;;  %v1135_v38 = vsub.f32 %v3371_v1, %v1125_v48  ;;  %v2816_v1 = vpop.xlane.xlu1 %788 }
 0x35d   :  { %v2793_v35 = vpop.eup %1494  ;;  %1508 = vpow2.f32 %v1248_v3 }
 0x35e   :  { %3372 = vst [vmem:[#allocation15_spill] sm:$0xff] %v2793_v35  ;;  %v1149_v41 = vmul.f32 1.442695, %v1135_v38  ;;  %v953_v60 = vsel %vm341_vm9, %v2793_v35, 0.0  ;;  %v2803_v11 = vpop.eup %1496  ;;  %v3378_v38 = vld [vmem:[#allocation35_spill] sm:$0xff] }
 0x35f   :  { %3374 = vst [vmem:[#allocation31_spill] sm:$0xff] %v2803_v11  ;;  %v1222_v47 = vpop.xlane.xlu0 %1221  ;;  %1048 = vadd.xlane.f32.xlu1 %v1047_v28  ;;  %954 = vadd.xlane.f32.xlu0 %v953_v60  ;;  %v1059_v20 = vsel %vm341_vm9, %v2803_v11, 0.0  ;;  %v3381_v60 = vld [vmem:[#allocation18_spill] sm:$0xff] }
 0x360   :  { %1510 = vpow2.f32 %v1149_v41  ;;  %v1240_v13 = vsub.f32 %v3375_v6, %v1222_v47  ;;  %v388_v41 = vmul.f32 1.442695, %v373_v19  ;;  %v478_v28 = vsub.f32 %v3381_v60, %v2705_v7  ;;  %v3384_v19 = vld [vmem:[#allocation19_spill] sm:$0xff]  ;;  %v801_v7 = vpop.xlane.xlu1 %800 }
 0x361   :  { %v2806_v36 = vpop.eup %1498  ;;  %1512 = vpow2.f32 %v1256_v5 }
 0x362   :  { %3376 = vst [vmem:[#allocation16_spill] sm:$0xff] %v2806_v36  ;;  %v2808_v3 = vpop.eup %1500  ;;  %v1250_v16 = vmul.f32 1.442695, %v1240_v13  ;;  %v1050_v40 = vsel %vm341_vm9, %v2806_v36, 0.0 }
 0x363   :  { %v1234_v48 = vpop.xlane.xlu0 %1233  ;;  %1060 = vadd.xlane.f32.xlu1 %v1059_v20  ;;  %1051 = vadd.xlane.f32.xlu0 %v1050_v40  ;;  %v1156_v42 = vsel %vm341_vm9, %v2808_v3, 0.0  ;;  %v482_v40 = vsub.f32 %v3384_v19, %v2727_v0 }
 0x364   :  { %1514 = vpow2.f32 %v1250_v16  ;;  %v1244_v5 = vsub.f32 %v3378_v38, %v1234_v48  ;;  %v489_v16 = vmul.f32 1.442695, %v478_v28  ;;  %v898_v28 = vpop.xlane.xlu1 %897 }
 0x365   :  { %v2819_v46 = vpop.eup %1502  ;;  %1516 = vpow2.f32 %v380_v23 }
 0x366   :  { %3379 = vst [vmem:[#allocation33_spill] sm:$0xff] %v2819_v46  ;;  %v2823_v52 = vpop.eup %1504  ;;  %v1258_v47 = vmul.f32 1.442695, %v1244_v5  ;;  %v1062_v6 = vsel %vm341_vm9, %v2819_v46, 0.0 }
 0x367   :  { %3380 = vst [vmem:[#allocation17_spill] sm:$0xff] %v2823_v52  ;;  %1157 = vadd.xlane.f32.xlu1 %v1156_v42  ;;  %1063 = vadd.xlane.f32.xlu0 %v1062_v6  ;;  %v1168_v23 = vsel %vm341_vm9, %v2823_v52, 0.0  ;;  %v497_v42 = vmul.f32 1.442695, %v482_v40 }
 0x368   :  { %1518 = vpow2.f32 %v1258_v47 }
 0x369   :  { %v2829_v13 = vpop.eup %1506  ;;  %1520 = vpow2.f32 %v388_v41  ;;  %v3387_v41 = vld [vmem:[#allocation20_spill] sm:$0xff] }
 0x36a   :  { %3382 = vst [vmem:[#allocation35_spill] sm:$0xff] %v2829_v13  ;;  %v2833_v17 = vpop.eup %1508  ;;  %v1159_v20 = vsel %vm341_vm9, %v2829_v13, 0.0  ;;  %1522 = vpow2.f32 %v489_v16  ;;  %v587_v60 = vsub.f32 %v3387_v41, %v2742_v44  ;;  %v3390_v16 = vld [vmem:[#allocation21_spill] sm:$0xff] }
 0x36b   :  { %3383 = vst [vmem:[#allocation18_spill] sm:$0xff] %v2833_v17  ;;  %1169 = vadd.xlane.f32.xlu1 %v1168_v23  ;;  %1160 = vadd.xlane.f32.xlu0 %v1159_v20  ;;  %v1265_v38 = vsel %vm341_vm9, %v2833_v17, 0.0  ;;  %1524 = vpow2.f32 %v497_v42  ;;  %v591_v40 = vsub.f32 %v3390_v16, %v2760_v27  ;;  %v3392_v42 = vld [vmem:[#allocation22_spill] sm:$0xff] }
 0x36c   :  { %v598_v19 = vmul.f32 1.442695, %v587_v60  ;;  %v696_v60 = vsub.f32 %v3392_v42, %v2779_v14 }
 0x36d   :  { %v2839_v48 = vpop.eup %1510 }
 0x36e   :  { %3385 = vst [vmem:[#allocation19_spill] sm:$0xff] %v2839_v48  ;;  %v2843_v5 = vpop.eup %1512  ;;  %v1171_v0 = vsel %vm341_vm9, %v2839_v48, 0.0  ;;  %1526 = vpow2.f32 %v598_v19  ;;  %v910_v48 = vpop.xlane.xlu1 %909 }
 0x36f   :  { %3386 = vst [vmem:[#allocation46_spill] sm:$0xff] %v2843_v5  ;;  %1266 = vadd.xlane.f32.xlu1 %v1265_v38  ;;  %1172 = vadd.xlane.f32.xlu0 %v1171_v0  ;;  %v1277_v6 = vsel %vm341_vm9, %v2843_v5, 0.0  ;;  %v606_v0 = vmul.f32 1.442695, %v591_v40 }
 0x371   :  { %v2849_v47 = vpop.eup %1514  ;;  %1528 = vpow2.f32 %v606_v0 }
 0x372   :  { %3388 = vst [vmem:[#allocation20_spill] sm:$0xff] %v2849_v47  ;;  %v2853_v23 = vpop.eup %1516  ;;  %v1268_v44 = vsel %vm341_vm9, %v2849_v47, 0.0  ;;  %v3394_v47 = vld [vmem:[#allocation23_spill] sm:$0xff]  ;;  %v1007_v14 = vpop.xlane.xlu1 %1006 }
 0x373   :  { %3389 = vst [vmem:[#allocation47_spill] sm:$0xff] %v2853_v23  ;;  %1278 = vadd.xlane.f32.xlu1 %v1277_v6  ;;  %1269 = vadd.xlane.f32.xlu0 %v1268_v44  ;;  %v399_v41 = vsel %vm341_vm9, %v2853_v23, 0.0  ;;  %v707_v44 = vmul.f32 1.442695, %v696_v60  ;;  %v700_v23 = vsub.f32 %v3394_v47, %v2797_v53 }
 0x374   :  { %v2861_v38 = vpop.xlane.xlu0 %391 }
 0x375   :  { %v2859_v20 = vpop.eup %1518  ;;  %1530 = vpow2.f32 %v707_v44 }
 0x376   :  { %3391 = vst [vmem:[#allocation21_spill] sm:$0xff] %v2859_v20  ;;  %v1280_v27 = vsel %vm341_vm9, %v2859_v20, 0.0  ;;  %v2869_v16 = vpop.eup %1520  ;;  %v715_v20 = vmul.f32 1.442695, %v700_v23  ;;  %v1019_v46 = vpop.xlane.xlu1 %1018 }
 0x377   :  { %3393 = vst [vmem:[#allocation22_spill] sm:$0xff] %v2869_v16  ;;  %400 = vadd.xlane.f32.xlu1 %v399_v41  ;;  %1281 = vadd.xlane.f32.xlu0 %v1280_v27  ;;  %v411_v19 = vsel %vm341_vm9, %v2869_v16, 0.0  ;;  %v2877_v40 = vpop.eup %1522  ;;  %v3396_v41 = vld [vmem:[#allocation24_spill] sm:$0xff]  ;;  %v3398_v16 = vld [vmem:[#allocation25_spill] sm:$0xff] }
 0x378   :  { %v2871_v6 = vpop.xlane.xlu0 %403  ;;  %3395 = vst [vmem:[#allocation23_spill] sm:$0xff] %v2877_v40  ;;  %v805_v27 = vsub.f32 %v3396_v41, %v2816_v1  ;;  %v508_v0 = vsel %vm341_vm9, %v2877_v40, 0.0  ;;  %v2885_v60 = vpop.eup %1524  ;;  %1532 = vpow2.f32 %v715_v20  ;;  %v3400_v40 = vld [vmem:[#allocation26_spill] sm:$0xff] }
 0x379   :  { %3397 = vst [vmem:[#allocation24_spill] sm:$0xff] %v2885_v60  ;;  %v520_v44 = vsel %vm341_vm9, %v2885_v60, 0.0  ;;  %v914_v5 = vsub.f32 %v3400_v40, %v898_v28  ;;  %v3402_v60 = vld [vmem:[#allocation27_spill] sm:$0xff] }
 0x37a   :  { %v816_v47 = vmul.f32 1.442695, %v805_v27  ;;  %v918_v35 = vsub.f32 %v3402_v60, %v910_v48  ;;  %v3406_v60 = vld [vmem:[#allocation29_spill] sm:$0xff] }
 0x37b   :  { %412 = vadd.xlane.f32.xlu1 %v411_v19  ;;  %v809_v19 = vsub.f32 %v3398_v16, %v801_v7  ;;  %v2892_v23 = vpop.eup %1526  ;;  %v1116_v7 = vpop.xlane.xlu1 %1115  ;;  %v925_v27 = vmul.f32 1.442695, %v914_v5 }
 0x37c   :  { %v2879_v42 = vpop.xlane.xlu0 %500  ;;  %3399 = vst [vmem:[#allocation25_spill] sm:$0xff] %v2892_v23  ;;  %1534 = vpow2.f32 %v816_v47  ;;  %v933_v40 = vmul.f32 1.442695, %v918_v35 }
 0x37d   :  { %v824_v41 = vmul.f32 1.442695, %v809_v19  ;;  %v3404_v19 = vld [vmem:[#allocation28_spill] sm:$0xff] }
 0x37e   :  { %v2899_v20 = vpop.eup %1528 }
 0x37f   :  { %509 = vadd.xlane.f32.xlu1 %v508_v0  ;;  %v617_v0 = vsel %vm341_vm9, %v2892_v23, 0.0  ;;  %3401 = vst [vmem:[#allocation26_spill] sm:$0xff] %v2899_v20  ;;  %1536 = vpow2.f32 %v824_v41  ;;  %v1023_v23 = vsub.f32 %v3404_v19, %v1007_v14  ;;  %v1128_v31 = vpop.xlane.xlu1 %1127  ;;  %v1027_v41 = vsub.f32 %v3406_v60, %v1019_v46  ;;  %v3408_v19 = vld [vmem:[#allocation30_spill] sm:$0xff] }
 0x380   :  { %v2887_v53 = vpop.xlane.xlu0 %512  ;;  %1538 = vpow2.f32 %v925_v27 }
 0x381   :  { %1540 = vpow2.f32 %v933_v40  ;;  %v1034_v48 = vmul.f32 1.442695, %v1023_v23  ;;  %v1042_v27 = vmul.f32 1.442695, %v1027_v41  ;;  %v3410_v40 = vld [vmem:[#allocation32_spill] sm:$0xff] }
 0x382   :  { %v2906_v47 = vpop.eup %1530  ;;  %v1136_v60 = vsub.f32 %v3410_v40, %v1128_v31  ;;  %v3413_v41 = vld [vmem:[#allocation36_spill] sm:$0xff] }
 0x383   :  { %521 = vadd.xlane.f32.xlu1 %v520_v44  ;;  %v629_v44 = vsel %vm341_vm9, %v2899_v20, 0.0  ;;  %3403 = vst [vmem:[#allocation27_spill] sm:$0xff] %v2906_v47  ;;  %v1225_v35 = vpop.xlane.xlu1 %1224  ;;  %1542 = vpow2.f32 %v1034_v48  ;;  %v3412_v48 = vld [vmem:[#allocation34_spill] sm:$0xff] }
 0x384   :  { %v2894_v1 = vpop.xlane.xlu0 %609  ;;  %1544 = vpow2.f32 %v1042_v27  ;;  %v1151_v36 = vmul.f32 1.442695, %v1136_v60 }
 0x385   :  { %v2911_v13 = vpop.eup %1532 }
 0x386   :  { %3405 = vst [vmem:[#allocation28_spill] sm:$0xff] %v2911_v13 }
 0x387   :  { %618 = vadd.xlane.f32.xlu1 %v617_v0  ;;  %v726_v0 = vsel %vm341_vm9, %v2906_v47, 0.0  ;;  %v1132_v47 = vsub.f32 %v3408_v19, %v1116_v7  ;;  %v1241_v7 = vsub.f32 %v3412_v48, %v1225_v35 }
 0x388   :  { %v2901_v16 = vpop.xlane.xlu0 %621 }
 0x389   :  { %v2916_v20 = vpop.eup %1534  ;;  %v1143_v46 = vmul.f32 1.442695, %v1132_v47  ;;  %v1252_v31 = vmul.f32 1.442695, %v1241_v7 }
 0x38a   :  { %3407 = vst [vmem:[#allocation29_spill] sm:$0xff] %v2916_v20 }
 0x38b   :  { %630 = vadd.xlane.f32.xlu1 %v629_v44  ;;  %v738_v44 = vsel %vm341_vm9, %v2911_v13, 0.0  ;;  %v1237_v13 = vpop.xlane.xlu1 %1236  ;;  %1546 = vpow2.f32 %v1143_v46 }
 0x38c   :  { %v719_v28 = vpop.xlane.xlu0 %718  ;;  %v2921_v29 = vpop.eup %1536  ;;  %v1245_v19 = vsub.f32 %v3413_v41, %v1237_v13  ;;  %1548 = vpow2.f32 %v1151_v36 }
 0x38d   :  { %3409 = vst [vmem:[#allocation30_spill] sm:$0xff] %v2921_v29  ;;  %v2926_v52 = vpop.eup %1538  ;;  %1550 = vpow2.f32 %v1252_v31 }
 0x38e   :  { %3411 = vst [vmem:[#allocation32_spill] sm:$0xff] %v2926_v52  ;;  %v944_v27 = vsel %vm341_vm9, %v2926_v52, 0.0  ;;  %v2932_v47 = vpop.eup %1540 }
 0x38f   :  { %727 = vadd.xlane.f32.xlu1 %v726_v0  ;;  %v835_v0 = vsel %vm341_vm9, %v2916_v20, 0.0  ;;  %3414 = vst [vmem:[#allocation34_spill] sm:$0xff] %v2932_v47 }
 0x390   :  { %v731_v5 = vpop.xlane.xlu0 %730 }
 0x393   :  { %739 = vadd.xlane.f32.xlu1 %v738_v44  ;;  %v847_v44 = vsel %vm341_vm9, %v2921_v29, 0.0  ;;  %v2936_v29 = vpop.eup %1542 }
 0x394   :  { %v828_v14 = vpop.xlane.xlu0 %827  ;;  %3415 = vst [vmem:[#allocation36_spill] sm:$0xff] %v2936_v29  ;;  %v1053_v35 = vsel %vm341_vm9, %v2936_v29, 0.0  ;;  %v2941_v46 = vpop.eup %1544 }
 0x395   :  { %3416 = vst [vmem:[#allocation48_spill] sm:$0xff] %v2941_v46  ;;  %v1065_v60 = vsel %vm341_vm9, %v2941_v46, 0.0 }
 0x397   :  { %836 = vadd.xlane.f32.xlu1 %v835_v0  ;;  %v1260_v0 = vmul.f32 1.442695, %v1245_v19 }
 0x398   :  { %v840_v23 = vpop.xlane.xlu0 %839  ;;  %v2949_v48 = vpop.eup %1546 }
 0x399   :  { %1552 = vpow2.f32 %v1260_v0  ;;  %3417 = vst [vmem:[#allocation49_spill] sm:$0xff] %v2949_v48 }
 0x39a   :  { %1554 = vrcp.f32 %v2861_v38 }
 0x39b   :  { %848 = vadd.xlane.f32.xlu1 %v847_v44  ;;  %v956_v44 = vsel %vm341_vm9, %v2932_v47, 0.0  ;;  %1556 = vrcp.f32 %v2871_v6  ;;  %v1162_v6 = vsel %vm341_vm9, %v2949_v48, 0.0 }
 0x39c   :  { %v937_v20 = vpop.xlane.xlu0 %936  ;;  %1558 = vrcp.f32 %v2879_v42  ;;  %v2954_v42 = vpop.eup %1548 }
 0x39d   :  { %1560 = vrcp.f32 %v2887_v53  ;;  %3418 = vst [vmem:[#allocation50_spill] sm:$0xff] %v2954_v42  ;;  %v2956_v53 = vpop.eup %1550 }
 0x39e   :  { %1562 = vrcp.f32 %v2894_v1  ;;  %3419 = vst [vmem:[#allocation51_spill] sm:$0xff] %v2956_v53  ;;  %v1271_v19 = vsel %vm341_vm9, %v2956_v53, 0.0 }
 0x39f   :  { %945 = vadd.xlane.f32.xlu1 %v944_v27  ;;  %1564 = vrcp.f32 %v2901_v16  ;;  %v1174_v16 = vsel %vm341_vm9, %v2954_v42, 0.0 }
 0x3a0   :  { %v949_v40 = vpop.xlane.xlu0 %948  ;;  %1566 = vrcp.f32 %v719_v28 }
 0x3a1   :  { %1568 = vrcp.f32 %v731_v5 }
 0x3a2   :  { %1570 = vrcp.f32 %v828_v14 }
 0x3a3   :  { %957 = vadd.xlane.f32.xlu1 %v956_v44  ;;  %1572 = vrcp.f32 %v937_v20 }
 0x3a4   :  { %v1046_v13 = vpop.xlane.xlu0 %1045 }
 0x3a5   :  { %1574 = vrcp.f32 %v1046_v13 }
 0x3a6   :  { %v2958_v7 = vpop.eup %1552 }
 0x3a7   :  { %1054 = vadd.xlane.f32.xlu1 %v1053_v35  ;;  %3420 = vst [vmem:[#allocation52_spill] sm:$0xff] %v2958_v7  ;;  %v1555_v28 = vpop.eup %1554  ;;  %v1283_v35 = vsel %vm341_vm9, %v2958_v7, 0.0 }
 0x3a8   :  { %v1058_v36 = vpop.xlane.xlu0 %1057  ;;  %v1557_v5 = vpop.eup %1556 }
 0x3a9   :  { %v1559_v14 = vpop.eup %1558 }
 0x3aa   :  { %v1561_v41 = vpop.eup %1560 }
 0x3ab   :  { %1066 = vadd.xlane.f32.xlu1 %v1065_v60  ;;  %v1563_v27 = vpop.eup %1562  ;;  %v531_v60 = vmul.f32 %v1559_v14, %v2537_v63  ;;  %v3425_v14 = vld [vmem:[#allocation38_spill] sm:$0xff] }
 0x3ac   :  { %v1155_v38 = vpop.xlane.xlu0 %1154  ;;  %v1565_v31 = vpop.eup %1564 }
 0x3ad   :  { %1576 = vrcp.f32 %v1155_v38  ;;  %v1567_v0 = vpop.eup %1566 }
 0x3ae   :  { %1578 = vrcp.f32 %v840_v23  ;;  %v1569_v13 = vpop.eup %1568 }
 0x3af   :  { %1163 = vadd.xlane.f32.xlu1 %v1162_v6  ;;  %1580 = vrcp.f32 %v949_v40  ;;  %v422_v40 = vmul.f32 %v1555_v28, %v2524_v51  ;;  %v640_v6 = vmul.f32 %v1563_v27, %v2549_v24  ;;  %v3423_v28 = vld [vmem:[#allocation37_spill] sm:$0xff] }
 0x3b0   :  { %v1167_v1 = vpop.xlane.xlu0 %1166  ;;  %1582 = vrcp.f32 %v1058_v36  ;;  %v1571_v36 = vpop.eup %1570 }
 0x3b1   :  { %1584 = vrcp.f32 %v1167_v1  ;;  %v1573_v38 = vpop.eup %1572  ;;  %v430_v51 = vsel %vm329_vm8, %v422_v40, 0.0  ;;  %v858_v7 = vmul.f32 %v1571_v36, %v2575_v33  ;;  %v3429_v36 = vld [vmem:[#allocation41_spill] sm:$0xff] }
 0x3b2   :  { %v539_v63 = vsel %vm1934_vm10, %v531_v60, %v430_v51  ;;  %v967_v24 = vmul.f32 %v1573_v38, %v2587_v15  ;;  %v753_v11 = vmul.f32 %v1569_v13, %v3429_v36  ;;  %v3433_v13 = vld [vmem:[#allocation43_spill] sm:$0xff] }
 0x3b3   :  { %1175 = vadd.xlane.f32.xlu1 %v1174_v16  ;;  %v1575_v16 = vpop.eup %1574 }
 0x3b4   :  { %v1264_v20 = vpop.xlane.xlu0 %1263  ;;  %v1076_v40 = vmul.f32 %v1575_v16, %v2601_v43 }
 0x3b5   :  { %1586 = vrcp.f32 %v1264_v20  ;;  %v3421_v20 = vld [vmem:[#allocation40_spill] sm:$0xff] }
 0x3b7   :  { %1272 = vadd.xlane.f32.xlu1 %v1271_v19  ;;  %v749_v19 = vmul.f32 %v1567_v0, %v3421_v20  ;;  %v648_v0 = vsel %vm1994_vm13, %v640_v6, %v539_v63  ;;  %v3427_v20 = vld [vmem:[#allocation39_spill] sm:$0xff] }
 0x3b8   :  { %v2964_v23 = vpop.xlane.xlu1 %394  ;;  %v1276_v44 = vpop.xlane.xlu0 %1275  ;;  %v644_v52 = vmul.f32 %v1565_v31, %v3427_v20  ;;  %v3431_v31 = vld [vmem:[#allocation42_spill] sm:$0xff] }
 0x3b9   :  { %1588 = vrcp.f32 %v1276_v44  ;;  %v426_v44 = vmul.f32 %v1557_v5, %v3423_v28  ;;  %v757_v33 = vsel %vm2028_vm0, %v749_v19, %v648_v0 }
 0x3ba   :  { %v1577_v53 = vpop.eup %1576  ;;  %v866_v6 = vsel %vm2062_vm3, %v858_v7, %v757_v33  ;;  %1590 = vrcp.f32 %v2964_v23 }
 0x3bb   :  { %1284 = vadd.xlane.f32.xlu1 %v1283_v35  ;;  %v1579_v47 = vpop.eup %1578  ;;  %v535_v35 = vmul.f32 %v1561_v41, %v3425_v14  ;;  %v1185_v60 = vmul.f32 %v1577_v53, %v2617_v49  ;;  %v434_v15 = vsel %vm329_vm8, %v426_v44, 0.0  ;;  %v975_v19 = vsel %vm2096_vm6, %v967_v24, %v866_v6 }
 0x3bc   :  { %v407_v1 = vpop.xlane.xlu1 %406  ;;  %v398_v42 = vpop.xlane.xlu0 %397  ;;  %v862_v63 = vmul.f32 %v1579_v47, %v3431_v31  ;;  %v1084_v44 = vsel %vm2130_vm12, %v1076_v40, %v975_v19 }
 0x3bd   :  { %v1581_v27 = vpop.eup %1580  ;;  %v543_v16 = vsel %vm1934_vm10, %v535_v35, %v434_v15  ;;  %v1193_v36 = vsel %vm2164_vm1, %v1185_v60, %v1084_v44  ;;  %1592 = vrcp.f32 %v407_v1 }
 0x3be   :  { %v1583_v5 = vpop.eup %1582  ;;  %v971_v0 = vmul.f32 %v1581_v27, %v3433_v13  ;;  %v652_v49 = vsel %vm1994_vm13, %v644_v52, %v543_v16  ;;  %1594 = vrcp.f32 %v398_v42 }
 0x3bf   :  { %v1585_v51 = vpop.eup %1584  ;;  %v1080_v20 = vmul.f32 %v1583_v5, %v2608_v22  ;;  %v761_v33 = vsel %vm2028_vm0, %v753_v11, %v652_v49 }
 0x3c0   :  { %v504_v17 = vpop.xlane.xlu1 %503  ;;  %v410_v41 = vpop.xlane.xlu0 %409  ;;  %v1189_v24 = vmul.f32 %v1585_v51, %v2626_v57  ;;  %v870_v52 = vsel %vm2062_vm3, %v862_v63, %v761_v33 }
 0x3c1   :  { %v979_v22 = vsel %vm2096_vm6, %v971_v0, %v870_v52  ;;  %1596 = vrcp.f32 %v504_v17 }
 0x3c2   :  { %v1587_v43 = vpop.eup %1586  ;;  %1598 = vrcp.f32 %v410_v41 }
 0x3c3   :  { %v1294_v7 = vmul.f32 %v1587_v43, %v2633_v8  ;;  %v1088_v8 = vsel %vm2130_vm12, %v1080_v20, %v979_v22 }
 0x3c4   :  { %v516_v47 = vpop.xlane.xlu1 %515  ;;  %v507_v27 = vpop.xlane.xlu0 %506  ;;  %v1197_v5 = vsel %vm2164_vm1, %v1189_v24, %v1088_v8 }
 0x3c5   :  { %v1302_v40 = vsel %vm2198_vm5, %v1294_v7, %v1193_v36  ;;  %1600 = vrcp.f32 %v516_v47 }
 0x3c6   :  { %v1589_v6 = vpop.eup %1588  ;;  %1310 = vst.msk [vmem:[%s3235_s3] sm:$0xff] %vm341_vm9, %v1302_v40  ;;  %1602 = vrcp.f32 %v507_v27 }
 0x3c7   :  { %v1298_v57 = vmul.f32 %v1589_v6, %v2642_v2  ;;  %v1591_v23 = vpop.eup %1590 }
 0x3c8   :  { %v613_v11 = vpop.xlane.xlu1 %612  ;;  %v519_v60 = vpop.xlane.xlu0 %518 }
 0x3c9   :  { %v1306_v51 = vsel %vm2198_vm5, %v1298_v57, %v1197_v5  ;;  %1604 = vrcp.f32 %v613_v11 }
 0x3ca   :  { %1314 = vst.msk [vmem:[%s3235_s3 + $0x20] sm:$0xff] %vm341_vm9, %v1306_v51  ;;  %1606 = vrcp.f32 %v519_v60  ;;  %v1593_v52 = vpop.eup %1592 }
 0x3cb   :  { %v1595_v17 = vpop.eup %1594 }
 0x3cc   :  { %v625_v31 = vpop.xlane.xlu1 %624  ;;  %v616_v63 = vpop.xlane.xlu0 %615 }
 0x3cd   :  { %1608 = vrcp.f32 %v625_v31 }
 0x3ce   :  { %1610 = vrcp.f32 %v616_v63  ;;  %v1597_v42 = vpop.eup %1596 }
 0x3cf   :  { %v1599_v47 = vpop.eup %1598 }
 0x3d0   :  { %v722_v43 = vpop.xlane.xlu1 %721  ;;  %v628_v16 = vpop.xlane.xlu0 %627 }
 0x3d1   :  { %1612 = vrcp.f32 %v722_v43 }
 0x3d2   :  { %1614 = vrcp.f32 %v628_v16  ;;  %v1601_v40 = vpop.eup %1600 }
 0x3d3   :  { %v1603_v6 = vpop.eup %1602 }
 0x3d4   :  { %v734_v19 = vpop.xlane.xlu1 %733  ;;  %v725_v13 = vpop.xlane.xlu0 %724 }
 0x3d5   :  { %1616 = vrcp.f32 %v734_v19 }
 0x3d6   :  { %1618 = vrcp.f32 %v725_v13  ;;  %v1605_v22 = vpop.eup %1604 }
 0x3d7   :  { %v1607_v57 = vpop.eup %1606 }
 0x3d8   :  { %v831_v2 = vpop.xlane.xlu1 %830  ;;  %v737_v0 = vpop.xlane.xlu0 %736 }
 0x3d9   :  { %1620 = vrcp.f32 %v831_v2 }
 0x3da   :  { %1622 = vrcp.f32 %v737_v0  ;;  %v1609_v5 = vpop.eup %1608 }
 0x3db   :  { %v1611_v60 = vpop.eup %1610 }
 0x3dc   :  { %v843_v49 = vpop.xlane.xlu1 %842  ;;  %v834_v44 = vpop.xlane.xlu0 %833 }
 0x3dd   :  { %1624 = vrcp.f32 %v843_v49 }
 0x3de   :  { %1626 = vrcp.f32 %v834_v44  ;;  %v1613_v51 = vpop.eup %1612 }
 0x3df   :  { %v3031_v63 = vpop.eup %1614 }
 0x3e0   :  { %v940_v20 = vpop.xlane.xlu1 %939  ;;  %v846_v7 = vpop.xlane.xlu0 %845 }
 0x3e1   :  { %1628 = vrcp.f32 %v940_v20 }
 0x3e2   :  { %1630 = vrcp.f32 %v846_v7  ;;  %v1617_v16 = vpop.eup %1616  ;;  %v423_v7 = vmul.f32 %v1591_v23, %v2645_v26  ;;  %v537_v23 = vmul.f32 %v1607_v57, %v2695_v18  ;;  %v642_v18 = vmul.f32 %v1611_v60, %v2708_v4 }
 0x3e3   :  { %v1619_v19 = vpop.eup %1618 }
 0x3e4   :  { %v952_v33 = vpop.xlane.xlu1 %951  ;;  %v943_v36 = vpop.xlane.xlu0 %942 }
 0x3e5   :  { %1632 = vrcp.f32 %v952_v33 }
 0x3e6   :  { %1634 = vrcp.f32 %v943_v36  ;;  %v1621_v13 = vpop.eup %1620  ;;  %v424_v36 = vmul.f32 %v1595_v17, %v2658_v25  ;;  %v431_v25 = vsel %vm329_vm8, %v423_v7, 0.0 }
 0x3e7   :  { %v3033_v0 = vpop.eup %1622 }
 0x3e8   :  { %v1049_v24 = vpop.xlane.xlu1 %1048  ;;  %v955_v1 = vpop.xlane.xlu0 %954 }
 0x3e9   :  { %1636 = vrcp.f32 %v1049_v24  ;;  %v427_v24 = vmul.f32 %v1593_v52, %v2653_v9  ;;  %v533_v9 = vmul.f32 %v1603_v6, %v2682_v37  ;;  %v641_v52 = vmul.f32 %v1605_v22, %v2684_v59 }
 0x3ea   :  { %v1625_v44 = vpop.eup %1624  ;;  %v859_v6 = vmul.f32 %v1621_v13, %v2736_v55 }
 0x3eb   :  { %v1627_v20 = vpop.eup %1626 }
 0x3ec   :  { %v1061_v41 = vpop.xlane.xlu1 %1060  ;;  %v1052_v27 = vpop.xlane.xlu0 %1051 }
 0x3ee   :  { %v1629_v33 = vpop.eup %1628 }
 0x3f0   :  { %v1158_v8 = vpop.xlane.xlu1 %1157  ;;  %v1064_v11 = vpop.xlane.xlu0 %1063 }
 0x3f1   :  { %1638 = vrcp.f32 %v1158_v8  ;;  %v428_v8 = vmul.f32 %v1599_v47, %v2671_v32  ;;  %v435_v32 = vsel %vm329_vm8, %v427_v24, 0.0 }
 0x3f2   :  { %1640 = vrcp.f32 %v1061_v41 }
 0x3f3   :  { %1642 = vrcp.f32 %v1052_v27  ;;  %v3038_v27 = vpop.eup %1630  ;;  %v436_v37 = vsel %vm329_vm8, %v428_v8, 0.0 }
 0x3f4   :  { %v1170_v31 = vpop.xlane.xlu1 %1169  ;;  %v1161_v43 = vpop.xlane.xlu0 %1160 }
 0x3f5   :  { %1644 = vrcp.f32 %v1170_v31  ;;  %v532_v31 = vmul.f32 %v1597_v42, %v2666_v30  ;;  %v432_v30 = vsel %vm329_vm8, %v424_v36, 0.0  ;;  %v750_v42 = vmul.f32 %v1613_v51, %v2714_v54 }
 0x3f6   :  { %1646 = vrcp.f32 %v1161_v43  ;;  %v754_v54 = vmul.f32 %v1617_v16, %v2723_v50  ;;  %v541_v51 = vsel %vm1934_vm10, %v533_v9, %v432_v30 }
 0x3f7   :  { %v540_v59 = vsel %vm1934_vm10, %v532_v31, %v431_v25  ;;  %v650_v36 = vsel %vm1994_vm13, %v642_v18, %v541_v51  ;;  %v3445_v51 = vld [vmem:[#allocation46_spill] sm:$0xff] }
 0x3f8   :  { %v1267_v2 = vpop.xlane.xlu1 %1266  ;;  %v1173_v49 = vpop.xlane.xlu0 %1172  ;;  %v649_v4 = vsel %vm1994_vm13, %v641_v52, %v540_v59 }
 0x3f9   :  { %1648 = vrcp.f32 %v1267_v2  ;;  %v536_v2 = vmul.f32 %v1601_v40, %v2679_v10  ;;  %v645_v10 = vmul.f32 %v1609_v5, %v2699_v45  ;;  %v758_v50 = vsel %vm2028_vm0, %v750_v42, %v649_v4  ;;  %v3446_v4 = vld [vmem:[#allocation33_spill] sm:$0xff] }
 0x3fa   :  { %1650 = vrcp.f32 %v955_v1  ;;  %v1633_v1 = vpop.eup %1632  ;;  %v867_v24 = vsel %vm2062_vm3, %v859_v6, %v758_v50  ;;  %v3443_v6 = vld [vmem:[#allocation45_spill] sm:$0xff] }
 0x3fb   :  { %1652 = vrcp.f32 %v1064_v11  ;;  %v1635_v26 = vpop.eup %1634  ;;  %v544_v45 = vsel %vm1934_vm10, %v536_v2, %v435_v32  ;;  %v968_v11 = vmul.f32 %v1629_v33, %v2766_v21  ;;  %v751_v21 = vmul.f32 %v1619_v19, %v2732_v56 }
 0x3fc   :  { %1654 = vrcp.f32 %v1173_v49  ;;  %v1279_v41 = vpop.xlane.xlu1 %1278  ;;  %v1270_v43 = vpop.xlane.xlu0 %1269  ;;  %v545_v49 = vsel %vm1934_vm10, %v537_v23, %v436_v37  ;;  %v653_v13 = vsel %vm1994_vm13, %v645_v10, %v544_v45  ;;  %v972_v31 = vmul.f32 %v1633_v1, %v2773_v12  ;;  %v3440_v12 = vld [vmem:[#allocation17_spill] sm:$0xff]  ;;  %v3442_v10 = vld [vmem:[#allocation35_spill] sm:$0xff] }
 0x3fd   :  { %1656 = vrcp.f32 %v1279_v41  ;;  %v1637_v17 = vpop.eup %1636  ;;  %v863_v41 = vmul.f32 %v1625_v44, %v2753_v62  ;;  %v762_v56 = vsel %vm2028_vm0, %v754_v54, %v653_v13  ;;  %v976_v19 = vsel %vm2096_vm6, %v968_v11, %v867_v24  ;;  %v3438_v62 = vld [vmem:[#allocation18_spill] sm:$0xff]  ;;  %v3444_v54 = vld [vmem:[#allocation15_spill] sm:$0xff]  ;;  %v3447_v13 = vld [vmem:[#allocation20_spill] sm:$0xff] }
 0x3fe   :  { %1658 = vrcp.f32 %v1270_v43  ;;  %v1639_v40 = vpop.eup %1638  ;;  %v1077_v55 = vmul.f32 %v1637_v17, %v2790_v61  ;;  %v646_v61 = vmul.f32 %v3031_v63, %v2719_v34  ;;  %v969_v2 = vmul.f32 %v1635_v26, %v2782_v39  ;;  %v3437_v63 = vld [vmem:[#allocation31_spill] sm:$0xff]  ;;  %v3441_v26 = vld [vmem:[#allocation44_spill] sm:$0xff] }
 0x3ff   :  { %v1641_v57 = vpop.eup %1640  ;;  %v1186_v16 = vmul.f32 %v1639_v40, %v2808_v3  ;;  %v860_v3 = vmul.f32 %v1627_v20, %v2756_v58  ;;  %v759_v23 = vsel %vm2028_vm0, %v751_v21, %v650_v36  ;;  %v3439_v58 = vld [vmem:[#allocation16_spill] sm:$0xff]  ;;  %v755_v30 = vmul.f32 %v3033_v0, %v3441_v26  ;;  %v3448_v36 = vld [vmem:[#allocation19_spill] sm:$0xff] }
 0x400   :  { %v3054_v47 = vpop.xlane.xlu1 %400  ;;  %v1282_v22 = vpop.xlane.xlu0 %1281  ;;  %v1085_v34 = vsel %vm2130_vm12, %v1077_v55, %v976_v19  ;;  %v1081_v25 = vmul.f32 %v1641_v57, %v3437_v63  ;;  %v871_v32 = vsel %vm2062_vm3, %v863_v41, %v762_v56  ;;  %v654_v59 = vsel %vm1994_vm13, %v646_v61, %v545_v49 }
 0x401   :  { %1660 = vrcp.f32 %v1282_v22  ;;  %v1643_v5 = vpop.eup %1642  ;;  %v1194_v52 = vsel %vm2164_vm1, %v1186_v16, %v1085_v34  ;;  %v868_v18 = vsel %vm2062_vm3, %v860_v3, %v759_v23  ;;  %v864_v22 = vmul.f32 %v3038_v27, %v3443_v6 }
 0x402   :  { %v1645_v60 = vpop.eup %1644  ;;  %v1078_v20 = vmul.f32 %v1643_v5, %v3439_v58  ;;  %v980_v0 = vsel %vm2096_vm6, %v972_v31, %v871_v32  ;;  %v977_v45 = vsel %vm2096_vm6, %v969_v2, %v868_v18  ;;  %v763_v16 = vsel %vm2028_vm0, %v755_v30, %v654_v59  ;;  %v3449_v31 = vld [vmem:[#allocation21_spill] sm:$0xff]  ;;  %v3450_v59 = vld [vmem:[#allocation47_spill] sm:$0xff] }
 0x403   :  { %v1647_v33 = vpop.eup %1646  ;;  %v1190_v1 = vmul.f32 %v1645_v60, %v3440_v12  ;;  %v1089_v5 = vsel %vm2130_vm12, %v1081_v25, %v980_v0  ;;  %v872_v41 = vsel %vm2062_vm3, %v864_v22, %v763_v16  ;;  %1662 = vrcp.f32 %v3054_v47  ;;  %v3451_v22 = vld [vmem:[#allocation23_spill] sm:$0xff]  ;;  %v3456_v16 = vld [vmem:[#allocation24_spill] sm:$0xff] }
 0x404   :  { %v3079_v7 = vpop.xlane.xlu1 %412  ;;  %v1187_v42 = vmul.f32 %v1647_v33, %v3442_v10  ;;  %v1086_v27 = vsel %vm2130_vm12, %v1078_v20, %v977_v45  ;;  %v3452_v45 = vld [vmem:[#allocation25_spill] sm:$0xff] }
 0x405   :  { %v1198_v60 = vsel %vm2164_vm1, %v1190_v1, %v1089_v5  ;;  %1664 = vrcp.f32 %v3079_v7  ;;  %v3453_v5 = vld [vmem:[#allocation27_spill] sm:$0xff] }
 0x406   :  { %v1649_v8 = vpop.eup %1648  ;;  %v1195_v33 = vsel %vm2164_vm1, %v1187_v42, %v1086_v27 }
 0x407   :  { %v1651_v43 = vpop.eup %1650  ;;  %v1295_v44 = vmul.f32 %v1649_v8, %v3438_v62 }
 0x408   :  { %v1653_v9 = vpop.eup %1652  ;;  %v510_v17 = vpop.xlane.xlu1 %509  ;;  %v973_v11 = vmul.f32 %v1651_v43, %v3444_v54 }
 0x409   :  { %v1655_v39 = vpop.eup %1654  ;;  %v1303_v40 = vsel %vm2198_vm5, %v1295_v44, %v1194_v52  ;;  %v1082_v55 = vmul.f32 %v1653_v9, %v3446_v4  ;;  %1666 = vrcp.f32 %v510_v17  ;;  %v3454_v4 = vld [vmem:[#allocation22_spill] sm:$0xff] }
 0x40a   :  { %v1657_v37 = vpop.eup %1656  ;;  %1311 = vst.msk [vmem:[%s3235_s3 + $0x8] sm:$0xff] %vm341_vm9, %v1303_v40  ;;  %v1191_v61 = vmul.f32 %v1655_v39, %v3448_v36  ;;  %v981_v3 = vsel %vm2096_vm6, %v973_v11, %v872_v41  ;;  %v3457_v36 = vld [vmem:[#allocation32_spill] sm:$0xff] }
 0x40b   :  { %v1659_v57 = vpop.eup %1658  ;;  %v1299_v49 = vmul.f32 %v1657_v37, %v3445_v51  ;;  %v1090_v19 = vsel %vm2130_vm12, %v1082_v55, %v981_v3  ;;  %v3459_v3 = vld [vmem:[#allocation36_spill] sm:$0xff] }
 0x40c   :  { %v1296_v50 = vmul.f32 %v1659_v57, %v3447_v13  ;;  %v522_v21 = vpop.xlane.xlu1 %521  ;;  %v1199_v34 = vsel %vm2164_vm1, %v1191_v61, %v1090_v19 }
 0x40d   :  { %v1307_v24 = vsel %vm2198_vm5, %v1299_v49, %v1198_v60  ;;  %1668 = vrcp.f32 %v522_v21  ;;  %v3455_v60 = vld [vmem:[#allocation29_spill] sm:$0xff] }
 0x40e   :  { %v1304_v8 = vsel %vm2198_vm5, %v1296_v50, %v1195_v33  ;;  %1315 = vst.msk [vmem:[%s3235_s3 + $0x28] sm:$0xff] %vm341_vm9, %v1307_v24  ;;  %v1661_v56 = vpop.eup %1660 }
 0x40f   :  { %1312 = vst.msk [vmem:[%s3235_s3 + $0x10] sm:$0xff] %vm341_vm9, %v1304_v8  ;;  %v1300_v43 = vmul.f32 %v1661_v56, %v3449_v31  ;;  %v3458_v8 = vld [vmem:[#allocation26_spill] sm:$0xff] }
 0x410   :  { %v619_v2 = vpop.xlane.xlu1 %618  ;;  %v1663_v26 = vpop.eup %1662 }
 0x411   :  { %v1308_v63 = vsel %vm2198_vm5, %v1300_v43, %v1199_v34  ;;  %1670 = vrcp.f32 %v619_v2  ;;  %v425_v18 = vmul.f32 %v1663_v26, %v3450_v59  ;;  %v3460_v2 = vld [vmem:[#allocation28_spill] sm:$0xff] }
 0x412   :  { %1316 = vst.msk [vmem:[%s3235_s3 + $0x30] sm:$0xff] %vm341_vm9, %v1308_v63  ;;  %v1665_v30 = vpop.eup %1664  ;;  %v3461_v63 = vld [vmem:[#allocation49_spill] sm:$0xff] }
 0x413   :  { %v433_v27 = vsel %vm329_vm8, %v425_v18, 0.0  ;;  %v429_v55 = vmul.f32 %v1665_v30, %v3454_v4  ;;  %v3464_v30 = vld [vmem:[#allocation48_spill] sm:$0xff] }
 0x414   :  { %v631_v25 = vpop.xlane.xlu1 %630  ;;  %v3467_v18 = vld [vmem:[#allocation52_spill] sm:$0xff] }
 0x415   :  { %1672 = vrcp.f32 %v631_v25 }
 0x416   :  { %v1667_v47 = vpop.eup %1666 }
 0x417   :  { %v534_v0 = vmul.f32 %v1667_v47, %v3451_v22 }
 0x418   :  { %v728_v62 = vpop.xlane.xlu1 %727 }
 0x419   :  { %1674 = vrcp.f32 %v728_v62  ;;  %v542_v21 = vsel %vm1934_vm10, %v534_v0, %v433_v27 }
 0x41a   :  { %v1669_v17 = vpop.eup %1668 }
 0x41b   :  { %v538_v33 = vmul.f32 %v1669_v17, %v3456_v16 }
 0x41c   :  { %v740_v44 = vpop.xlane.xlu1 %739 }
 0x41d   :  { %1676 = vrcp.f32 %v740_v44  ;;  %v437_v44 = vsel %vm329_vm8, %v429_v55, 0.0 }
 0x41e   :  { %v1671_v32 = vpop.eup %1670 }
 0x41f   :  { %v643_v54 = vmul.f32 %v1671_v32, %v3452_v45 }
 0x420   :  { %v837_v9 = vpop.xlane.xlu1 %836 }
 0x421   :  { %1678 = vrcp.f32 %v837_v9  ;;  %v651_v41 = vsel %vm1994_vm13, %v643_v54, %v542_v21 }
 0x422   :  { %v1673_v10 = vpop.eup %1672 }
 0x423   :  { %v647_v56 = vmul.f32 %v1673_v10, %v3458_v8  ;;  %v3466_v10 = vld [vmem:[#allocation50_spill] sm:$0xff] }
 0x424   :  { %v849_v23 = vpop.xlane.xlu1 %848 }
 0x426   :  { %v1675_v42 = vpop.eup %1674 }
 0x427   :  { %v752_v51 = vmul.f32 %v1675_v42, %v3453_v5 }
 0x428   :  { %v946_v58 = vpop.xlane.xlu1 %945 }
 0x429   :  { %1680 = vrcp.f32 %v946_v58  ;;  %v760_v43 = vsel %vm2028_vm0, %v752_v51, %v651_v41 }
 0x42a   :  { %v1677_v37 = vpop.eup %1676 }
 0x42b   :  { %v756_v34 = vmul.f32 %v1677_v37, %v3460_v2 }
 0x42c   :  { %v958_v20 = vpop.xlane.xlu1 %957 }
 0x42e   :  { %v1679_v6 = vpop.eup %1678 }
 0x42f   :  { %v861_v13 = vmul.f32 %v1679_v6, %v3455_v60 }
 0x430   :  { %v1055_v52 = vpop.xlane.xlu1 %1054 }
 0x431   :  { %1682 = vrcp.f32 %v1055_v52  ;;  %v869_v9 = vsel %vm2062_vm3, %v861_v13, %v760_v43  ;;  %v546_v52 = vsel %vm1934_vm10, %v538_v33, %v437_v44 }
 0x432   :  { %v655_v26 = vsel %vm1994_vm13, %v647_v56, %v546_v52 }
 0x433   :  { %v764_v32 = vsel %vm2028_vm0, %v756_v34, %v655_v26 }
 0x434   :  { %v1067_v12 = vpop.xlane.xlu1 %1066 }
 0x436   :  { %v1681_v57 = vpop.eup %1680 }
 0x437   :  { %v970_v61 = vmul.f32 %v1681_v57, %v3457_v36 }
 0x438   :  { %v1164_v1 = vpop.xlane.xlu1 %1163 }
 0x439   :  { %1684 = vrcp.f32 %v1164_v1  ;;  %v3463_v1 = vld [vmem:[#allocation34_spill] sm:$0xff] }
 0x43a   :  { %1686 = vrcp.f32 %v849_v23  ;;  %v3462_v23 = vld [vmem:[#allocation30_spill] sm:$0xff] }
 0x43b   :  { %1688 = vrcp.f32 %v958_v20 }
 0x43c   :  { %v1176_v39 = vpop.xlane.xlu1 %1175  ;;  %1690 = vrcp.f32 %v1067_v12  ;;  %v978_v12 = vsel %vm2096_vm6, %v970_v61, %v869_v9 }
 0x43d   :  { %1692 = vrcp.f32 %v1176_v39 }
 0x43e   :  { %v1683_v11 = vpop.eup %1682 }
 0x43f   :  { %v1079_v19 = vmul.f32 %v1683_v11, %v3459_v3 }
 0x440   :  { %v1273_v7 = vpop.xlane.xlu1 %1272 }
 0x441   :  { %1694 = vrcp.f32 %v1273_v7  ;;  %v1087_v46 = vsel %vm2130_vm12, %v1079_v19, %v978_v12  ;;  %v3465_v7 = vld [vmem:[#allocation51_spill] sm:$0xff] }
 0x444   :  { %v1285_v40 = vpop.xlane.xlu1 %1284 }
 0x445   :  { %1696 = vrcp.f32 %v1285_v40 }
 0x446   :  { %v1685_v49 = vpop.eup %1684 }
 0x447   :  { %v1687_v50 = vpop.eup %1686  ;;  %v1188_v25 = vmul.f32 %v1685_v49, %v3461_v63 }
 0x448   :  { %v1689_v24 = vpop.eup %1688  ;;  %v865_v58 = vmul.f32 %v1687_v50, %v3462_v23 }
 0x449   :  { %v1691_v31 = vpop.eup %1690  ;;  %v974_v39 = vmul.f32 %v1689_v24, %v3463_v1  ;;  %v1196_v48 = vsel %vm2164_vm1, %v1188_v25, %v1087_v46 }
 0x44a   :  { %v1693_v62 = vpop.eup %1692  ;;  %v1083_v47 = vmul.f32 %v1691_v31, %v3464_v30  ;;  %v873_v40 = vsel %vm2062_vm3, %v865_v58, %v764_v32 }
 0x44b   :  { %v1192_v42 = vmul.f32 %v1693_v62, %v3466_v10  ;;  %v982_v59 = vsel %vm2096_vm6, %v974_v39, %v873_v40 }
 0x44c   :  { %v1091_v28 = vsel %vm2130_vm12, %v1083_v47, %v982_v59 }
 0x44d   :  { %v1200_v38 = vsel %vm2164_vm1, %v1192_v42, %v1091_v28 }
 0x44e   :  { %v1695_v20 = vpop.eup %1694 }
 0x44f   :  { %v1297_v17 = vmul.f32 %v1695_v20, %v3465_v7 }
 0x451   :  { %v1305_v29 = vsel %vm2198_vm5, %v1297_v17, %v1196_v48 }
 0x452   :  { %v1697_v37 = vpop.eup %1696  ;;  %1313 = vst.msk [vmem:[%s3235_s3 + $0x18] sm:$0xff] %vm341_vm9, %v1305_v29 }
 0x453   :  { %v1301_v6 = vmul.f32 %v1697_v37, %v3467_v18 }
 0x455   :  { %v1309_v22 = vsel %vm2198_vm5, %v1301_v6, %v1200_v38 }
 0x456   :  { %1317 = vst.msk [vmem:[%s3235_s3 + $0x38] sm:$0xff] %vm341_vm9, %v1309_v22 }
 0x457   :  { %1322 = vsyncpa [#allocation4], 1 }

</bundles_post_ra>
